<compile_context>
chip_gen: v7x
topology: tpu7x:2x2x1
jax: 0.10.0
libtpu: 0.0.40
codegen_flags: <defaults>
</compile_context>

<pallas_src>
import functools

import jax
import jax.numpy as jnp
from jax.experimental import pallas as pl
from jax.experimental.pallas import tpu as pltpu


_STREAM_DTYPE = jnp.bfloat16   # dtype of activation streams through HBM
_CH_ALIGN = 8                  # channel rounding (f32 sublane / MXU alignment)


# --------------------------------------------------------------------------
# small helpers
# --------------------------------------------------------------------------
def _round_up(x, m):
    return (x + m - 1) // m * m


def _pad_dim(a, axis, new_size):
    if a.shape[axis] == new_size:
        return a
    pad = [(0, 0)] * a.ndim
    pad[axis] = (0, new_size - a.shape[axis])
    return jnp.pad(a, pad)


def _vmem_limit_bytes():
    # Generation-aware scoped-VMEM limit: ~half of physical capacity
    # (v5e/v6e: 64 MiB of 128 MiB; v7x: 32 MiB of 64 MiB).  Safe fallback.
    try:
        cap = pltpu.get_tpu_info().vmem_capacity_bytes
        return int(min(cap // 2, 100 * 1024 * 1024))
    except Exception:
        return 32 * 1024 * 1024


# --------------------------------------------------------------------------
# Pallas kernels (one image per grid step; conv done as 9 shifted tap matmuls)
# --------------------------------------------------------------------------
def _conv1_kernel(xph_ref, w_ref, b_ref, o_ref, *, stride, hps, ho, wo):
    """3x3 conv (stride s, pad 1) + folded BN + ReLU.

    xph_ref : (1, s*s*hps, wps, C)  stride-phase-split padded input (bf16)
    w_ref   : (9, C, Co)            BN-folded conv weight (f32, resident)
    b_ref   : (1, Co)               BN-folded bias (f32, resident)
    o_ref   : (1, ho+2, wo+2, Co)   output written WITH conv2's zero padding (bf16)
    """
    s = stride
    c_in = w_ref.shape[1]
    c_out = w_ref.shape[2]
    acc = jnp.zeros((ho * wo, c_out), jnp.float32)
    for di in range(3):
        for dj in range(3):
            ph = (di % s) * s + (dj % s)          # which stride phase
            r0 = ph * hps + di // s               # row offset inside that phase
            c0 = dj // s
            xs = xph_ref[0, r0:r0 + ho, c0:c0 + wo, :].astype(jnp.float32)
            acc = acc + jnp.dot(xs.reshape(ho * wo, c_in),
                                w_ref[3 * di + dj, :, :],
                                preferred_element_type=jnp.float32)
    y = jnp.maximum(acc + b_ref[...], 0.0)
    # Zero the whole block (this is conv2's zero padding), then write interior.
    o_ref[...] = jnp.zeros(o_ref.shape, o_ref.dtype)
    o_ref[0, 1:ho + 1, 1:wo + 1, :] = y.reshape(ho, wo, c_out).astype(o_ref.dtype)


def _conv2_kernel(h_ref, w_ref, xs_ref, ws_ref, b_ref, o_ref, *, ho, wo):
    """3x3 conv (stride 1) + BN2 + shortcut (identity or 1x1-proj+BN) + ReLU.

    h_ref  : (1, ho+2, wo+2, C2)  conv1 output, already zero padded (bf16)
    w_ref  : (9, C2, Co)          BN-folded conv2 weight (f32, resident)
    xs_ref : (1, ho, wo, Cs)      shortcut input stream (bf16, real channel width)
    ws_ref : (Cs, Co)             shortcut weight (folded 1x1 proj, or identity)
    b_ref  : (1, Co)              combined bias b2 + bs (f32, resident)
    o_ref  : (1, ho, wo, Co)      block output (bf16)
    """
    c2 = w_ref.shape[1]
    c_out = w_ref.shape[2]
    cs = ws_ref.shape[0]
    # shortcut as an extra tap matmul directly into the f32 accumulator
    xs = xs_ref[0].astype(jnp.float32)
    acc = jnp.dot(xs.reshape(ho * wo, cs), ws_ref[...],
                  preferred_element_type=jnp.float32)
    for di in range(3):
        for dj in range(3):
            hs = h_ref[0, di:di + ho, dj:dj + wo, :].astype(jnp.float32)
            acc = acc + jnp.dot(hs.reshape(ho * wo, c2),
                                w_ref[3 * di + dj, :, :],
                                preferred_element_type=jnp.float32)
    y = jnp.maximum(acc + b_ref[...], 0.0)
    o_ref[0, :, :, :] = y.reshape(ho, wo, c_out).astype(o_ref.dtype)


# --------------------------------------------------------------------------
# pallas_call wrappers
# --------------------------------------------------------------------------
def conv1_call(x_nhwc, w9, bias, *, stride):
    """x: (N,H,W,C) bf16.  Returns conv1+BN1+ReLU, zero-padded for conv2:
    (N, Ho+2, Wo+2, Co) bf16."""
    s = stride
    n, h, w, c = x_nhwc.shape
    ho = (h - 1) // s + 1
    wo = (w - 1) // s + 1
    co = w9.shape[-1]

    # spatial zero pad of 1, then split into s*s stride phases so every
    # in-kernel tap read is a contiguous (unstrided) VMEM slice.
    xp = jnp.pad(x_nhwc, ((0, 0), (1, 1), (1, 1), (0, 0)))
    hp, wp = h + 2, w + 2
    hps = -(-hp // s)
    wps = -(-wp // s)
    xp = jnp.pad(xp, ((0, 0), (0, hps * s - hp), (0, wps * s - wp), (0, 0)))
    phases = jnp.concatenate(
        [xp[:, pr::s, pc::s, :] for pr in range(s) for pc in range(s)], axis=1)
    # phases: (N, s*s*hps, wps, C), bf16

    kernel = functools.partial(_conv1_kernel, stride=s, hps=hps, ho=ho, wo=wo)
    return pl.pallas_call(
        kernel,
        out_shape=jax.ShapeDtypeStruct((n, ho + 2, wo + 2, co), _STREAM_DTYPE),
        grid_spec=pltpu.PrefetchScalarGridSpec(
            num_scalar_prefetch=0,
            grid=(n,),   # one image per step; >=2 parallel steps for v7x megacore
            in_specs=[
                pl.BlockSpec((1, s * s * hps, wps, c), lambda i: (i, 0, 0, 0)),
                pl.BlockSpec((9, w9.shape[1], co), lambda i: (0, 0, 0)),   # resident
                pl.BlockSpec((1, co), lambda i: (0, 0)),                    # resident
            ],
            out_specs=pl.BlockSpec((1, ho + 2, wo + 2, co),
                                   lambda i: (i, 0, 0, 0)),
        ),
        compiler_params=pltpu.CompilerParams(
            dimension_semantics=("parallel",),
            vmem_limit_bytes=_vmem_limit_bytes(),
        ),
    )(phases, w9.astype(jnp.float32),
      bias.reshape(1, co).astype(jnp.float32))


def conv2_call(h_pad, w9, xs, ws, bias):
    """conv2 + BN2 + shortcut + ReLU, fully fused.  Returns (N, Ho, Wo, Co) bf16."""
    n, hp2, wp2, c2 = h_pad.shape
    ho, wo = hp2 - 2, wp2 - 2
    co = w9.shape[-1]
    cs = xs.shape[-1]

    kernel = functools.partial(_conv2_kernel, ho=ho, wo=wo)
    return pl.pallas_call(
        kernel,
        out_shape=jax.ShapeDtypeStruct((n, ho, wo, co), _STREAM_DTYPE),
        grid_spec=pltpu.PrefetchScalarGridSpec(
            num_scalar_prefetch=0,
            grid=(n,),
            in_specs=[
                pl.BlockSpec((1, hp2, wp2, c2), lambda i: (i, 0, 0, 0)),
                pl.BlockSpec((9, c2, co), lambda i: (0, 0, 0)),   # resident
                pl.BlockSpec((1, ho, wo, cs), lambda i: (i, 0, 0, 0)),
                pl.BlockSpec((cs, co), lambda i: (0, 0)),          # resident
                pl.BlockSpec((1, co), lambda i: (0, 0)),           # resident
            ],
            out_specs=pl.BlockSpec((1, ho, wo, co), lambda i: (i, 0, 0, 0)),
        ),
        compiler_params=pltpu.CompilerParams(
            dimension_semantics=("parallel",),
            vmem_limit_bytes=_vmem_limit_bytes(),
        ),
    )(h_pad, w9.astype(jnp.float32), xs.astype(_STREAM_DTYPE),
      ws.astype(jnp.float32), bias.reshape(1, co).astype(jnp.float32))


# --------------------------------------------------------------------------
# Plain-JAX glue: BN folding (kept in f32 per the correctness note)
# --------------------------------------------------------------------------
def _bn_scale_bias(gamma, beta, mean, var, eps=1e-5):
    scale = gamma / jnp.sqrt(var + eps)
    return scale, beta - mean * scale


def fold_bn_conv3x3(w_oihw, gamma, beta, mean, var, eps=1e-5):
    """(O,I,3,3) weight + inference BN -> (9, I, O) tap weights (f32), (O,) bias."""
    scale, bias = _bn_scale_bias(gamma, beta, mean, var, eps)
    o, i, k, _ = w_oihw.shape
    w = jnp.transpose(w_oihw, (2, 3, 1, 0)).reshape(k * k, i, o)   # taps row-major
    return w * scale[None, None, :], bias


def fold_bn_conv1x1(w_oihw, gamma, beta, mean, var, eps=1e-5):
    scale, bias = _bn_scale_bias(gamma, beta, mean, var, eps)
    w = jnp.transpose(w_oihw[:, :, 0, 0], (1, 0))                  # (I, O)
    return w * scale[None, :], bias


# --------------------------------------------------------------------------
# Parameters (deterministic, synthetic)
# --------------------------------------------------------------------------
def init_params(key, in_channels, out_channels, stride):
    ks = jax.random.split(key, 9)

    def bn_params(k, c):
        kg, kb, km, kv = jax.random.split(k, 4)
        return dict(
            gamma=1.0 + 0.1 * jax.random.normal(kg, (c,), jnp.float32),
            beta=0.1 * jax.random.normal(kb, (c,), jnp.float32),
            mean=0.1 * jax.random.normal(km, (c,), jnp.float32),
            var=1.0 + 0.1 * jax.random.uniform(kv, (c,), jnp.float32),
        )

    params = dict(
        w1=0.1 * jax.random.normal(ks[0], (out_channels, in_channels, 3, 3),
                                   jnp.float32),
        bn1=bn_params(ks[1], out_channels),
        w2=0.1 * jax.random.normal(ks[2], (out_channels, out_channels, 3, 3),
                                   jnp.float32),
        bn2=bn_params(ks[3], out_channels),
        stride=stride,
        has_shortcut=(stride != 1 or in_channels != out_channels),
    )
    if params["has_shortcut"]:
        params["ws"] = 0.1 * jax.random.normal(
            ks[4], (out_channels, in_channels, 1, 1), jnp.float32)
        params["bns"] = bn_params(ks[5], out_channels)
    return params


# --------------------------------------------------------------------------
# ResidualBlock forward (NCHW in / NCHW out)
# --------------------------------------------------------------------------
def residual_block_forward(x_nchw, params):
    s = params["stride"]
    c_out = params["w1"].shape[0]
    c_in = params["w1"].shape[1]
    cip = _round_up(c_in, _CH_ALIGN)
    cop = _round_up(c_out, _CH_ALIGN)

    # NCHW -> NHWC and cast to bf16 UP FRONT: every downstream glue op and
    # every DMA into the kernels moves half the bytes.
    x = jnp.transpose(x_nchw, (0, 2, 3, 1)).astype(_STREAM_DTYPE)
    x = _pad_dim(x, 3, cip)
    n, h, w, _ = x.shape
    ho = (h - 1) // s + 1
    wo = (w - 1) // s + 1

    # ---- conv1 (3x3, stride s) + BN1 + ReLU (fused, no im2col) ----
    w1, b1 = fold_bn_conv3x3(params["w1"], **params["bn1"])
    w1 = _pad_dim(_pad_dim(w1, 1, cip), 2, cop)
    b1 = _pad_dim(b1, 0, cop)
    h1p = conv1_call(x, w1, b1, stride=s)     # (N, Ho+2, Wo+2, cop) bf16, zero-padded

    # ---- conv2 (3x3, stride 1) + BN2 + shortcut + ReLU (single fused kernel) ----
    w2, b2 = fold_bn_conv3x3(params["w2"], **params["bn2"])
    w2 = _pad_dim(_pad_dim(w2, 1, cop), 2, cop)
    b2 = _pad_dim(b2, 0, cop)

    if params["has_shortcut"]:
        ws, bs = fold_bn_conv1x1(params["ws"], **params["bns"])
        ws = _pad_dim(_pad_dim(ws, 0, cip), 1, cop)
        bs = _pad_dim(bs, 0, cop)
        xs = x[:, ::s, ::s, :][:, :ho, :wo, :]          # 1x1-proj input, bf16
    else:
        # identity shortcut expressed as a matmul with an identity weight:
        # residual streams at its real channel width in bf16 and is added in
        # the same f32 accumulator as conv2 (no padded f32 residual tensor).
        ws = _pad_dim(_pad_dim(jnp.eye(c_out, dtype=jnp.float32), 0, cop), 1, cop)
        bs = jnp.zeros((cop,), jnp.float32)
        xs = x                                           # cip == cop here

    out = conv2_call(h1p, w2, xs, ws, b2 + bs)           # (N, Ho, Wo, cop) bf16

    # Dropout(0.5): eval-mode identity.
    out = out[..., :c_out]
    return jnp.transpose(out, (0, 3, 1, 2)).astype(jnp.float32)   # -> NCHW f32


# --------------------------------------------------------------------------
# Pure-JAX reference (XLA conv, full f32) for validation
# --------------------------------------------------------------------------
def reference_forward(x_nchw, params):
    def conv(x, w, stride, pad):
        return jax.lax.conv_general_dilated(
            x, w, window_strides=(stride, stride),
            padding=((pad, pad), (pad, pad)),
            dimension_numbers=("NCHW", "OIHW", "NCHW"))

    def bn(x, p, eps=1e-5):
        g = p["gamma"].reshape(1, -1, 1, 1)
        b = p["beta"].reshape(1, -1, 1, 1)
        m = p["mean"].reshape(1, -1, 1, 1)
        v = p["var"].reshape(1, -1, 1, 1)
        return (x - m) / jnp.sqrt(v + eps) * g + b

    s = params["stride"]
    left = jax.nn.relu(bn(conv(x_nchw, params["w1"], s, 1), params["bn1"]))
    left = bn(conv(left, params["w2"], 1, 1), params["bn2"])
    if params["has_shortcut"]:
        short = bn(conv(x_nchw, params["ws"], s, 0), params["bns"])
    else:
        short = x_nchw
    return jax.nn.relu(left + short)


# --------------------------------------------------------------------------
if __name__ == "__main__":
    key = jax.random.PRNGKey(0)
    k_x1, k_p1, k_x2, k_p2 = jax.random.split(key, 4)

    # Case 1: projection shortcut (stride 2, 4 -> 8 channels).
    x1 = jax.random.normal(k_x1, (2, 4, 16, 16), jnp.float32)
    params1 = init_params(k_p1, 4, 8, 2)
    fwd1 = jax.jit(functools.partial(residual_block_forward, params=params1))
    out1 = jax.block_until_ready(fwd1(x1))
    ref1 = jax.block_until_ready(reference_forward(x1, params1))
    assert out1.shape == ref1.shape == (2, 8, 8, 8), out1.shape
    # bf16 activation streams / bf16 output store -> loosened tolerance
    assert jnp.allclose(out1, ref1, atol=3e-2, rtol=3e-2), \
        float(jnp.max(jnp.abs(out1 - ref1)))

    # Case 2: identity shortcut (stride 1, 8 -> 8 channels).
    x2 = jax.random.normal(k_x2, (2, 8, 16, 16), jnp.float32)
    params2 = init_params(k_p2, 8, 8, 1)
    fwd2 = jax.jit(functools.partial(residual_block_forward, params=params2))
    out2 = jax.block_until_ready(fwd2(x2))
    ref2 = jax.block_until_ready(reference_forward(x2, params2))
    assert out2.shape == ref2.shape == (2, 8, 16, 16), out2.shape
    assert jnp.allclose(out2, ref2, atol=3e-2, rtol=3e-2), \
        float(jnp.max(jnp.abs(out2 - ref2)))

    print("KERNEL_OK")
</pallas_src>

<mosaic_0001>
module attributes {stable_mosaic.version = 11 : i64} {
  func.func @_conv1_kernel(%arg0: i32, %arg1: memref<1x36x9x8xbf16, #tpu.memory_space<vmem>>, %arg2: memref<9x8x8xf32, #tpu.memory_space<vmem>>, %arg3: memref<1x8xf32, #tpu.memory_space<vmem>>, %arg4: memref<1x10x10x8xbf16, #tpu.memory_space<vmem>>) attributes {dimension_semantics = [#tpu.dimension_semantics<parallel>], iteration_bounds = array<i64: 2>, scalar_prefetch = 0 : i64, scratch_operands = 0 : i64, tpu.core_type = #tpu.core_type<tc>, window_params = [{transform_indices = @transform_0, window_bounds = array<i64: 1, 36, 9, 8>}, {pipeline_mode = #tpu.pipeline_mode<synchronous>, transform_indices = @transform_1, window_bounds = array<i64: 9, 8, 8>}, {pipeline_mode = #tpu.pipeline_mode<synchronous>, transform_indices = @transform_2, window_bounds = array<i64: 1, 8>}, {transform_indices = @transform_3, window_bounds = array<i64: 1, 10, 10, 8>}]} {
    %cst = arith.constant 0.000000e+00 : f32
    %0 = vector.broadcast %cst : f32 to vector<64x8xf32>
    %c0 = arith.constant 0 : index
    %c0_0 = arith.constant 0 : index
    %c0_1 = arith.constant 0 : index
    %c0_2 = arith.constant 0 : index
    %1 = vector.load %arg1[%c0, %c0_0, %c0_1, %c0_2] : memref<1x36x9x8xbf16, #tpu.memory_space<vmem>>, vector<1x8x8x8xbf16>
    %2 = vector.shape_cast %1 : vector<1x8x8x8xbf16> to vector<8x8x8xbf16>
    %3 = arith.extf %2 : vector<8x8x8xbf16> to vector<8x8x8xf32>
    %4 = vector.shape_cast %3 : vector<8x8x8xf32> to vector<64x8xf32>
    %c0_3 = arith.constant 0 : index
    %c0_4 = arith.constant 0 : index
    %c0_5 = arith.constant 0 : index
    %5 = vector.load %arg2[%c0_3, %c0_4, %c0_5] : memref<9x8x8xf32, #tpu.memory_space<vmem>>, vector<1x8x8xf32>
    %6 = vector.shape_cast %5 : vector<1x8x8xf32> to vector<8x8xf32>
    %cst_6 = arith.constant dense<0.000000e+00> : vector<64x8xf32>
    %7 = tpu.matmul %4, %6, %cst_6 {dimension_numbers = #tpu.dot_dimension_numbers<[1], [0], [0], [1], [0, 0, 1, 1], [], []>} : vector<64x8xf32>, vector<8x8xf32>, vector<64x8xf32> -> vector<64x8xf32>
    %8 = arith.addf %0, %7 : vector<64x8xf32>
    %c0_7 = arith.constant 0 : index
    %c9 = arith.constant 9 : index
    %c0_8 = arith.constant 0 : index
    %c0_9 = arith.constant 0 : index
    %9 = vector.load %arg1[%c0_7, %c9, %c0_8, %c0_9] : memref<1x36x9x8xbf16, #tpu.memory_space<vmem>>, vector<1x8x8x8xbf16>
    %10 = vector.shape_cast %9 : vector<1x8x8x8xbf16> to vector<8x8x8xbf16>
    %11 = arith.extf %10 : vector<8x8x8xbf16> to vector<8x8x8xf32>
    %12 = vector.shape_cast %11 : vector<8x8x8xf32> to vector<64x8xf32>
    %c1 = arith.constant 1 : index
    %c0_10 = arith.constant 0 : index
    %c0_11 = arith.constant 0 : index
    %13 = vector.load %arg2[%c1, %c0_10, %c0_11] : memref<9x8x8xf32, #tpu.memory_space<vmem>>, vector<1x8x8xf32>
    %14 = vector.shape_cast %13 : vector<1x8x8xf32> to vector<8x8xf32>
    %cst_12 = arith.constant dense<0.000000e+00> : vector<64x8xf32>
    %15 = tpu.matmul %12, %14, %cst_12 {dimension_numbers = #tpu.dot_dimension_numbers<[1], [0], [0], [1], [0, 0, 1, 1], [], []>} : vector<64x8xf32>, vector<8x8xf32>, vector<64x8xf32> -> vector<64x8xf32>
    %16 = arith.addf %8, %15 : vector<64x8xf32>
    %c0_13 = arith.constant 0 : index
    %c0_14 = arith.constant 0 : index
    %c1_15 = arith.constant 1 : index
    %c0_16 = arith.constant 0 : index
    %17 = vector.load %arg1[%c0_13, %c0_14, %c1_15, %c0_16] : memref<1x36x9x8xbf16, #tpu.memory_space<vmem>>, vector<1x8x8x8xbf16>
    %18 = vector.shape_cast %17 : vector<1x8x8x8xbf16> to vector<8x8x8xbf16>
    %19 = arith.extf %18 : vector<8x8x8xbf16> to vector<8x8x8xf32>
    %20 = vector.shape_cast %19 : vector<8x8x8xf32> to vector<64x8xf32>
    %c2 = arith.constant 2 : index
    %c0_17 = arith.constant 0 : index
    %c0_18 = arith.constant 0 : index
    %21 = vector.load %arg2[%c2, %c0_17, %c0_18] : memref<9x8x8xf32, #tpu.memory_space<vmem>>, vector<1x8x8xf32>
    %22 = vector.shape_cast %21 : vector<1x8x8xf32> to vector<8x8xf32>
    %cst_19 = arith.constant dense<0.000000e+00> : vector<64x8xf32>
    %23 = tpu.matmul %20, %22, %cst_19 {dimension_numbers = #tpu.dot_dimension_numbers<[1], [0], [0], [1], [0, 0, 1, 1], [], []>} : vector<64x8xf32>, vector<8x8xf32>, vector<64x8xf32> -> vector<64x8xf32>
    %24 = arith.addf %16, %23 : vector<64x8xf32>
    %c0_20 = arith.constant 0 : index
    %c18 = arith.constant 18 : index
    %c0_21 = arith.constant 0 : index
    %c0_22 = arith.constant 0 : index
    %25 = vector.load %arg1[%c0_20, %c18, %c0_21, %c0_22] : memref<1x36x9x8xbf16, #tpu.memory_space<vmem>>, vector<1x8x8x8xbf16>
    %26 = vector.shape_cast %25 : vector<1x8x8x8xbf16> to vector<8x8x8xbf16>
    %27 = arith.extf %26 : vector<8x8x8xbf16> to vector<8x8x8xf32>
    %28 = vector.shape_cast %27 : vector<8x8x8xf32> to vector<64x8xf32>
    %c3 = arith.constant 3 : index
    %c0_23 = arith.constant 0 : index
    %c0_24 = arith.constant 0 : index
    %29 = vector.load %arg2[%c3, %c0_23, %c0_24] : memref<9x8x8xf32, #tpu.memory_space<vmem>>, vector<1x8x8xf32>
    %30 = vector.shape_cast %29 : vector<1x8x8xf32> to vector<8x8xf32>
    %cst_25 = arith.constant dense<0.000000e+00> : vector<64x8xf32>
    %31 = tpu.matmul %28, %30, %cst_25 {dimension_numbers = #tpu.dot_dimension_numbers<[1], [0], [0], [1], [0, 0, 1, 1], [], []>} : vector<64x8xf32>, vector<8x8xf32>, vector<64x8xf32> -> vector<64x8xf32>
    %32 = arith.addf %24, %31 : vector<64x8xf32>
    %c0_26 = arith.constant 0 : index
    %c27 = arith.constant 27 : index
    %c0_27 = arith.constant 0 : index
    %c0_28 = arith.constant 0 : index
    %33 = vector.load %arg1[%c0_26, %c27, %c0_27, %c0_28] : memref<1x36x9x8xbf16, #tpu.memory_space<vmem>>, vector<1x8x8x8xbf16>
    %34 = vector.shape_cast %33 : vector<1x8x8x8xbf16> to vector<8x8x8xbf16>
    %35 = arith.extf %34 : vector<8x8x8xbf16> to vector<8x8x8xf32>
    %36 = vector.shape_cast %35 : vector<8x8x8xf32> to vector<64x8xf32>
    %c4 = arith.constant 4 : index
    %c0_29 = arith.constant 0 : index
    %c0_30 = arith.constant 0 : index
    %37 = vector.load %arg2[%c4, %c0_29, %c0_30] : memref<9x8x8xf32, #tpu.memory_space<vmem>>, vector<1x8x8xf32>
    %38 = vector.shape_cast %37 : vector<1x8x8xf32> to vector<8x8xf32>
    %cst_31 = arith.constant dense<0.000000e+00> : vector<64x8xf32>
    %39 = tpu.matmul %36, %38, %cst_31 {dimension_numbers = #tpu.dot_dimension_numbers<[1], [0], [0], [1], [0, 0, 1, 1], [], []>} : vector<64x8xf32>, vector<8x8xf32>, vector<64x8xf32> -> vector<64x8xf32>
    %40 = arith.addf %32, %39 : vector<64x8xf32>
    %c0_32 = arith.constant 0 : index
    %c18_33 = arith.constant 18 : index
    %c1_34 = arith.constant 1 : index
    %c0_35 = arith.constant 0 : index
    %41 = vector.load %arg1[%c0_32, %c18_33, %c1_34, %c0_35] : memref<1x36x9x8xbf16, #tpu.memory_space<vmem>>, vector<1x8x8x8xbf16>
    %42 = vector.shape_cast %41 : vector<1x8x8x8xbf16> to vector<8x8x8xbf16>
    %43 = arith.extf %42 : vector<8x8x8xbf16> to vector<8x8x8xf32>
    %44 = vector.shape_cast %43 : vector<8x8x8xf32> to vector<64x8xf32>
    %c5 = arith.constant 5 : index
    %c0_36 = arith.constant 0 : index
    %c0_37 = arith.constant 0 : index
    %45 = vector.load %arg2[%c5, %c0_36, %c0_37] : memref<9x8x8xf32, #tpu.memory_space<vmem>>, vector<1x8x8xf32>
    %46 = vector.shape_cast %45 : vector<1x8x8xf32> to vector<8x8xf32>
    %cst_38 = arith.constant dense<0.000000e+00> : vector<64x8xf32>
    %47 = tpu.matmul %44, %46, %cst_38 {dimension_numbers = #tpu.dot_dimension_numbers<[1], [0], [0], [1], [0, 0, 1, 1], [], []>} : vector<64x8xf32>, vector<8x8xf32>, vector<64x8xf32> -> vector<64x8xf32>
    %48 = arith.addf %40, %47 : vector<64x8xf32>
    %c0_39 = arith.constant 0 : index
    %c1_40 = arith.constant 1 : index
    %c0_41 = arith.constant 0 : index
    %c0_42 = arith.constant 0 : index
    %49 = vector.load %arg1[%c0_39, %c1_40, %c0_41, %c0_42] : memref<1x36x9x8xbf16, #tpu.memory_space<vmem>>, vector<1x8x8x8xbf16>
    %50 = vector.shape_cast %49 : vector<1x8x8x8xbf16> to vector<8x8x8xbf16>
    %51 = arith.extf %50 : vector<8x8x8xbf16> to vector<8x8x8xf32>
    %52 = vector.shape_cast %51 : vector<8x8x8xf32> to vector<64x8xf32>
    %c6 = arith.constant 6 : index
    %c0_43 = arith.constant 0 : index
    %c0_44 = arith.constant 0 : index
    %53 = vector.load %arg2[%c6, %c0_43, %c0_44] : memref<9x8x8xf32, #tpu.memory_space<vmem>>, vector<1x8x8xf32>
    %54 = vector.shape_cast %53 : vector<1x8x8xf32> to vector<8x8xf32>
    %cst_45 = arith.constant dense<0.000000e+00> : vector<64x8xf32>
    %55 = tpu.matmul %52, %54, %cst_45 {dimension_numbers = #tpu.dot_dimension_numbers<[1], [0], [0], [1], [0, 0, 1, 1], [], []>} : vector<64x8xf32>, vector<8x8xf32>, vector<64x8xf32> -> vector<64x8xf32>
    %56 = arith.addf %48, %55 : vector<64x8xf32>
    %c0_46 = arith.constant 0 : index
    %c10 = arith.constant 10 : index
    %c0_47 = arith.constant 0 : index
    %c0_48 = arith.constant 0 : index
    %57 = vector.load %arg1[%c0_46, %c10, %c0_47, %c0_48] : memref<1x36x9x8xbf16, #tpu.memory_space<vmem>>, vector<1x8x8x8xbf16>
    %58 = vector.shape_cast %57 : vector<1x8x8x8xbf16> to vector<8x8x8xbf16>
    %59 = arith.extf %58 : vector<8x8x8xbf16> to vector<8x8x8xf32>
    %60 = vector.shape_cast %59 : vector<8x8x8xf32> to vector<64x8xf32>
    %c7 = arith.constant 7 : index
    %c0_49 = arith.constant 0 : index
    %c0_50 = arith.constant 0 : index
    %61 = vector.load %arg2[%c7, %c0_49, %c0_50] : memref<9x8x8xf32, #tpu.memory_space<vmem>>, vector<1x8x8xf32>
    %62 = vector.shape_cast %61 : vector<1x8x8xf32> to vector<8x8xf32>
    %cst_51 = arith.constant dense<0.000000e+00> : vector<64x8xf32>
    %63 = tpu.matmul %60, %62, %cst_51 {dimension_numbers = #tpu.dot_dimension_numbers<[1], [0], [0], [1], [0, 0, 1, 1], [], []>} : vector<64x8xf32>, vector<8x8xf32>, vector<64x8xf32> -> vector<64x8xf32>
    %64 = arith.addf %56, %63 : vector<64x8xf32>
    %c0_52 = arith.constant 0 : index
    %c1_53 = arith.constant 1 : index
    %c1_54 = arith.constant 1 : index
    %c0_55 = arith.constant 0 : index
    %65 = vector.load %arg1[%c0_52, %c1_53, %c1_54, %c0_55] : memref<1x36x9x8xbf16, #tpu.memory_space<vmem>>, vector<1x8x8x8xbf16>
    %66 = vector.shape_cast %65 : vector<1x8x8x8xbf16> to vector<8x8x8xbf16>
    %67 = arith.extf %66 : vector<8x8x8xbf16> to vector<8x8x8xf32>
    %68 = vector.shape_cast %67 : vector<8x8x8xf32> to vector<64x8xf32>
    %c8 = arith.constant 8 : index
    %c0_56 = arith.constant 0 : index
    %c0_57 = arith.constant 0 : index
    %69 = vector.load %arg2[%c8, %c0_56, %c0_57] : memref<9x8x8xf32, #tpu.memory_space<vmem>>, vector<1x8x8xf32>
    %70 = vector.shape_cast %69 : vector<1x8x8xf32> to vector<8x8xf32>
    %cst_58 = arith.constant dense<0.000000e+00> : vector<64x8xf32>
    %71 = tpu.matmul %68, %70, %cst_58 {dimension_numbers = #tpu.dot_dimension_numbers<[1], [0], [0], [1], [0, 0, 1, 1], [], []>} : vector<64x8xf32>, vector<8x8xf32>, vector<64x8xf32> -> vector<64x8xf32>
    %72 = arith.addf %64, %71 : vector<64x8xf32>
    %c0_59 = arith.constant 0 : index
    %c0_60 = arith.constant 0 : index
    %73 = vector.load %arg3[%c0_59, %c0_60] : memref<1x8xf32, #tpu.memory_space<vmem>>, vector<1x8xf32>
    %74 = vector.broadcast %73 : vector<1x8xf32> to vector<64x8xf32>
    %75 = arith.addf %72, %74 : vector<64x8xf32>
    %cst_61 = arith.constant 0.000000e+00 : f32
    %76 = vector.broadcast %cst_61 : f32 to vector<64x8xf32>
    %77 = arith.maximumf %75, %76 : vector<64x8xf32>
    %cst_62 = arith.constant 0.000000e+00 : bf16
    %78 = vector.broadcast %cst_62 : bf16 to vector<1x10x10x8xbf16>
    %c0_63 = arith.constant 0 : index
    %c0_64 = arith.constant 0 : index
    %c0_65 = arith.constant 0 : index
    %c0_66 = arith.constant 0 : index
    %79 = vector.load %arg4[%c0_63, %c0_64, %c0_65, %c0_66] : memref<1x10x10x8xbf16, #tpu.memory_space<vmem>>, vector<1x10x10x8xbf16>
    tpu.vector_store %arg4[%c0_63, %c0_64, %c0_65, %c0_66], %78 {strides = array<i32>} : memref<1x10x10x8xbf16, #tpu.memory_space<vmem>>, vector<1x10x10x8xbf16>,
    %80 = vector.shape_cast %77 : vector<64x8xf32> to vector<8x8x8xf32>
    %81 = arith.truncf %80 : vector<8x8x8xf32> to vector<8x8x8xbf16>
    %c0_67 = arith.constant 0 : index
    %c1_68 = arith.constant 1 : index
    %c1_69 = arith.constant 1 : index
    %c0_70 = arith.constant 0 : index
    %82 = vector.load %arg4[%c0_67, %c1_68, %c1_69, %c0_70] : memref<1x10x10x8xbf16, #tpu.memory_space<vmem>>, vector<1x8x8x8xbf16>
    %83 = vector.shape_cast %82 : vector<1x8x8x8xbf16> to vector<8x8x8xbf16>
    %84 = vector.shape_cast %81 : vector<8x8x8xbf16> to vector<1x8x8x8xbf16>
    tpu.vector_store %arg4[%c0_67, %c1_68, %c1_69, %c0_70], %84 {strides = array<i32>} : memref<1x10x10x8xbf16, #tpu.memory_space<vmem>>, vector<1x8x8x8xbf16>,
    return
  }
  func.func @transform_0(%arg0: i32) -> (i32, i32, i32, i32) {
    %c0_i32 = arith.constant 0 : i32
    %c0_i32_0 = arith.constant 0 : i32
    %c0_i32_1 = arith.constant 0 : i32
    %c0_i32_2 = arith.constant 0 : i32
    return %arg0, %c0_i32, %c0_i32_0, %c0_i32_1 : i32, i32, i32, i32
  }
  func.func @transform_1(%arg0: i32) -> (i32, i32, i32) {
    %c0_i32 = arith.constant 0 : i32
    %c0_i32_0 = arith.constant 0 : i32
    %c0_i32_1 = arith.constant 0 : i32
    %c0_i32_2 = arith.constant 0 : i32
    return %c0_i32, %c0_i32_0, %c0_i32_1 : i32, i32, i32
  }
  func.func @transform_2(%arg0: i32) -> (i32, i32) {
    %c0_i32 = arith.constant 0 : i32
    %c0_i32_0 = arith.constant 0 : i32
    %c0_i32_1 = arith.constant 0 : i32
    return %c0_i32, %c0_i32_0 : i32, i32
  }
  func.func @transform_3(%arg0: i32) -> (i32, i32, i32, i32) {
    %c0_i32 = arith.constant 0 : i32
    %c0_i32_0 = arith.constant 0 : i32
    %c0_i32_1 = arith.constant 0 : i32
    %c0_i32_2 = arith.constant 0 : i32
    return %arg0, %c0_i32, %c0_i32_0, %c0_i32_1 : i32, i32, i32, i32
  }
}

module attributes {stable_mosaic.version = 11 : i64} {
  func.func @_conv2_kernel(%arg0: i32, %arg1: memref<1x10x10x8xbf16, #tpu.memory_space<vmem>>, %arg2: memref<9x8x8xf32, #tpu.memory_space<vmem>>, %arg3: memref<1x8x8x8xbf16, #tpu.memory_space<vmem>>, %arg4: memref<8x8xf32, #tpu.memory_space<vmem>>, %arg5: memref<1x8xf32, #tpu.memory_space<vmem>>, %arg6: memref<1x8x8x8xbf16, #tpu.memory_space<vmem>>) attributes {dimension_semantics = [#tpu.dimension_semantics<parallel>], iteration_bounds = array<i64: 2>, scalar_prefetch = 0 : i64, scratch_operands = 0 : i64, tpu.core_type = #tpu.core_type<tc>, window_params = [{transform_indices = @transform_0, window_bounds = array<i64: 1, 10, 10, 8>}, {pipeline_mode = #tpu.pipeline_mode<synchronous>, transform_indices = @transform_1, window_bounds = array<i64: 9, 8, 8>}, {transform_indices = @transform_2, window_bounds = array<i64: 1, 8, 8, 8>}, {pipeline_mode = #tpu.pipeline_mode<synchronous>, transform_indices = @transform_3, window_bounds = array<i64: 8, 8>}, {pipeline_mode = #tpu.pipeline_mode<synchronous>, transform_indices = @transform_4, window_bounds = array<i64: 1, 8>}, {transform_indices = @transform_5, window_bounds = array<i64: 1, 8, 8, 8>}]} {
    %c0 = arith.constant 0 : index
    %c0_0 = arith.constant 0 : index
    %c0_1 = arith.constant 0 : index
    %c0_2 = arith.constant 0 : index
    %0 = vector.load %arg3[%c0, %c0_0, %c0_1, %c0_2] : memref<1x8x8x8xbf16, #tpu.memory_space<vmem>>, vector<1x8x8x8xbf16>
    %1 = vector.shape_cast %0 : vector<1x8x8x8xbf16> to vector<8x8x8xbf16>
    %2 = arith.extf %1 : vector<8x8x8xbf16> to vector<8x8x8xf32>
    %3 = vector.shape_cast %2 : vector<8x8x8xf32> to vector<64x8xf32>
    %c0_3 = arith.constant 0 : index
    %c0_4 = arith.constant 0 : index
    %4 = vector.load %arg4[%c0_3, %c0_4] : memref<8x8xf32, #tpu.memory_space<vmem>>, vector<8x8xf32>
    %cst = arith.constant dense<0.000000e+00> : vector<64x8xf32>
    %5 = tpu.matmul %3, %4, %cst {dimension_numbers = #tpu.dot_dimension_numbers<[1], [0], [0], [1], [0, 0, 1, 1], [], []>} : vector<64x8xf32>, vector<8x8xf32>, vector<64x8xf32> -> vector<64x8xf32>
    %c0_5 = arith.constant 0 : index
    %c0_6 = arith.constant 0 : index
    %c0_7 = arith.constant 0 : index
    %c0_8 = arith.constant 0 : index
    %6 = vector.load %arg1[%c0_5, %c0_6, %c0_7, %c0_8] : memref<1x10x10x8xbf16, #tpu.memory_space<vmem>>, vector<1x8x8x8xbf16>
    %7 = vector.shape_cast %6 : vector<1x8x8x8xbf16> to vector<8x8x8xbf16>
    %8 = arith.extf %7 : vector<8x8x8xbf16> to vector<8x8x8xf32>
    %9 = vector.shape_cast %8 : vector<8x8x8xf32> to vector<64x8xf32>
    %c0_9 = arith.constant 0 : index
    %c0_10 = arith.constant 0 : index
    %c0_11 = arith.constant 0 : index
    %10 = vector.load %arg2[%c0_9, %c0_10, %c0_11] : memref<9x8x8xf32, #tpu.memory_space<vmem>>, vector<1x8x8xf32>
    %11 = vector.shape_cast %10 : vector<1x8x8xf32> to vector<8x8xf32>
    %cst_12 = arith.constant dense<0.000000e+00> : vector<64x8xf32>
    %12 = tpu.matmul %9, %11, %cst_12 {dimension_numbers = #tpu.dot_dimension_numbers<[1], [0], [0], [1], [0, 0, 1, 1], [], []>} : vector<64x8xf32>, vector<8x8xf32>, vector<64x8xf32> -> vector<64x8xf32>
    %13 = arith.addf %5, %12 : vector<64x8xf32>
    %c0_13 = arith.constant 0 : index
    %c0_14 = arith.constant 0 : index
    %c1 = arith.constant 1 : index
    %c0_15 = arith.constant 0 : index
    %14 = vector.load %arg1[%c0_13, %c0_14, %c1, %c0_15] : memref<1x10x10x8xbf16, #tpu.memory_space<vmem>>, vector<1x8x8x8xbf16>
    %15 = vector.shape_cast %14 : vector<1x8x8x8xbf16> to vector<8x8x8xbf16>
    %16 = arith.extf %15 : vector<8x8x8xbf16> to vector<8x8x8xf32>
    %17 = vector.shape_cast %16 : vector<8x8x8xf32> to vector<64x8xf32>
    %c1_16 = arith.constant 1 : index
    %c0_17 = arith.constant 0 : index
    %c0_18 = arith.constant 0 : index
    %18 = vector.load %arg2[%c1_16, %c0_17, %c0_18] : memref<9x8x8xf32, #tpu.memory_space<vmem>>, vector<1x8x8xf32>
    %19 = vector.shape_cast %18 : vector<1x8x8xf32> to vector<8x8xf32>
    %cst_19 = arith.constant dense<0.000000e+00> : vector<64x8xf32>
    %20 = tpu.matmul %17, %19, %cst_19 {dimension_numbers = #tpu.dot_dimension_numbers<[1], [0], [0], [1], [0, 0, 1, 1], [], []>} : vector<64x8xf32>, vector<8x8xf32>, vector<64x8xf32> -> vector<64x8xf32>
    %21 = arith.addf %13, %20 : vector<64x8xf32>
    %c0_20 = arith.constant 0 : index
    %c0_21 = arith.constant 0 : index
    %c2 = arith.constant 2 : index
    %c0_22 = arith.constant 0 : index
    %22 = vector.load %arg1[%c0_20, %c0_21, %c2, %c0_22] : memref<1x10x10x8xbf16, #tpu.memory_space<vmem>>, vector<1x8x8x8xbf16>
    %23 = vector.shape_cast %22 : vector<1x8x8x8xbf16> to vector<8x8x8xbf16>
    %24 = arith.extf %23 : vector<8x8x8xbf16> to vector<8x8x8xf32>
    %25 = vector.shape_cast %24 : vector<8x8x8xf32> to vector<64x8xf32>
    %c2_23 = arith.constant 2 : index
    %c0_24 = arith.constant 0 : index
    %c0_25 = arith.constant 0 : index
    %26 = vector.load %arg2[%c2_23, %c0_24, %c0_25] : memref<9x8x8xf32, #tpu.memory_space<vmem>>, vector<1x8x8xf32>
    %27 = vector.shape_cast %26 : vector<1x8x8xf32> to vector<8x8xf32>
    %cst_26 = arith.constant dense<0.000000e+00> : vector<64x8xf32>
    %28 = tpu.matmul %25, %27, %cst_26 {dimension_numbers = #tpu.dot_dimension_numbers<[1], [0], [0], [1], [0, 0, 1, 1], [], []>} : vector<64x8xf32>, vector<8x8xf32>, vector<64x8xf32> -> vector<64x8xf32>
    %29 = arith.addf %21, %28 : vector<64x8xf32>
    %c0_27 = arith.constant 0 : index
    %c1_28 = arith.constant 1 : index
    %c0_29 = arith.constant 0 : index
    %c0_30 = arith.constant 0 : index
    %30 = vector.load %arg1[%c0_27, %c1_28, %c0_29, %c0_30] : memref<1x10x10x8xbf16, #tpu.memory_space<vmem>>, vector<1x8x8x8xbf16>
    %31 = vector.shape_cast %30 : vector<1x8x8x8xbf16> to vector<8x8x8xbf16>
    %32 = arith.extf %31 : vector<8x8x8xbf16> to vector<8x8x8xf32>
    %33 = vector.shape_cast %32 : vector<8x8x8xf32> to vector<64x8xf32>
    %c3 = arith.constant 3 : index
    %c0_31 = arith.constant 0 : index
    %c0_32 = arith.constant 0 : index
    %34 = vector.load %arg2[%c3, %c0_31, %c0_32] : memref<9x8x8xf32, #tpu.memory_space<vmem>>, vector<1x8x8xf32>
    %35 = vector.shape_cast %34 : vector<1x8x8xf32> to vector<8x8xf32>
    %cst_33 = arith.constant dense<0.000000e+00> : vector<64x8xf32>
    %36 = tpu.matmul %33, %35, %cst_33 {dimension_numbers = #tpu.dot_dimension_numbers<[1], [0], [0], [1], [0, 0, 1, 1], [], []>} : vector<64x8xf32>, vector<8x8xf32>, vector<64x8xf32> -> vector<64x8xf32>
    %37 = arith.addf %29, %36 : vector<64x8xf32>
    %c0_34 = arith.constant 0 : index
    %c1_35 = arith.constant 1 : index
    %c1_36 = arith.constant 1 : index
    %c0_37 = arith.constant 0 : index
    %38 = vector.load %arg1[%c0_34, %c1_35, %c1_36, %c0_37] : memref<1x10x10x8xbf16, #tpu.memory_space<vmem>>, vector<1x8x8x8xbf16>
    %39 = vector.shape_cast %38 : vector<1x8x8x8xbf16> to vector<8x8x8xbf16>
    %40 = arith.extf %39 : vector<8x8x8xbf16> to vector<8x8x8xf32>
    %41 = vector.shape_cast %40 : vector<8x8x8xf32> to vector<64x8xf32>
    %c4 = arith.constant 4 : index
    %c0_38 = arith.constant 0 : index
    %c0_39 = arith.constant 0 : index
    %42 = vector.load %arg2[%c4, %c0_38, %c0_39] : memref<9x8x8xf32, #tpu.memory_space<vmem>>, vector<1x8x8xf32>
    %43 = vector.shape_cast %42 : vector<1x8x8xf32> to vector<8x8xf32>
    %cst_40 = arith.constant dense<0.000000e+00> : vector<64x8xf32>
    %44 = tpu.matmul %41, %43, %cst_40 {dimension_numbers = #tpu.dot_dimension_numbers<[1], [0], [0], [1], [0, 0, 1, 1], [], []>} : vector<64x8xf32>, vector<8x8xf32>, vector<64x8xf32> -> vector<64x8xf32>
    %45 = arith.addf %37, %44 : vector<64x8xf32>
    %c0_41 = arith.constant 0 : index
    %c1_42 = arith.constant 1 : index
    %c2_43 = arith.constant 2 : index
    %c0_44 = arith.constant 0 : index
    %46 = vector.load %arg1[%c0_41, %c1_42, %c2_43, %c0_44] : memref<1x10x10x8xbf16, #tpu.memory_space<vmem>>, vector<1x8x8x8xbf16>
    %47 = vector.shape_cast %46 : vector<1x8x8x8xbf16> to vector<8x8x8xbf16>
    %48 = arith.extf %47 : vector<8x8x8xbf16> to vector<8x8x8xf32>
    %49 = vector.shape_cast %48 : vector<8x8x8xf32> to vector<64x8xf32>
    %c5 = arith.constant 5 : index
    %c0_45 = arith.constant 0 : index
    %c0_46 = arith.constant 0 : index
    %50 = vector.load %arg2[%c5, %c0_45, %c0_46] : memref<9x8x8xf32, #tpu.memory_space<vmem>>, vector<1x8x8xf32>
    %51 = vector.shape_cast %50 : vector<1x8x8xf32> to vector<8x8xf32>
    %cst_47 = arith.constant dense<0.000000e+00> : vector<64x8xf32>
    %52 = tpu.matmul %49, %51, %cst_47 {dimension_numbers = #tpu.dot_dimension_numbers<[1], [0], [0], [1], [0, 0, 1, 1], [], []>} : vector<64x8xf32>, vector<8x8xf32>, vector<64x8xf32> -> vector<64x8xf32>
    %53 = arith.addf %45, %52 : vector<64x8xf32>
    %c0_48 = arith.constant 0 : index
    %c2_49 = arith.constant 2 : index
    %c0_50 = arith.constant 0 : index
    %c0_51 = arith.constant 0 : index
    %54 = vector.load %arg1[%c0_48, %c2_49, %c0_50, %c0_51] : memref<1x10x10x8xbf16, #tpu.memory_space<vmem>>, vector<1x8x8x8xbf16>
    %55 = vector.shape_cast %54 : vector<1x8x8x8xbf16> to vector<8x8x8xbf16>
    %56 = arith.extf %55 : vector<8x8x8xbf16> to vector<8x8x8xf32>
    %57 = vector.shape_cast %56 : vector<8x8x8xf32> to vector<64x8xf32>
    %c6 = arith.constant 6 : index
    %c0_52 = arith.constant 0 : index
    %c0_53 = arith.constant 0 : index
    %58 = vector.load %arg2[%c6, %c0_52, %c0_53] : memref<9x8x8xf32, #tpu.memory_space<vmem>>, vector<1x8x8xf32>
    %59 = vector.shape_cast %58 : vector<1x8x8xf32> to vector<8x8xf32>
    %cst_54 = arith.constant dense<0.000000e+00> : vector<64x8xf32>
    %60 = tpu.matmul %57, %59, %cst_54 {dimension_numbers = #tpu.dot_dimension_numbers<[1], [0], [0], [1], [0, 0, 1, 1], [], []>} : vector<64x8xf32>, vector<8x8xf32>, vector<64x8xf32> -> vector<64x8xf32>
    %61 = arith.addf %53, %60 : vector<64x8xf32>
    %c0_55 = arith.constant 0 : index
    %c2_56 = arith.constant 2 : index
    %c1_57 = arith.constant 1 : index
    %c0_58 = arith.constant 0 : index
    %62 = vector.load %arg1[%c0_55, %c2_56, %c1_57, %c0_58] : memref<1x10x10x8xbf16, #tpu.memory_space<vmem>>, vector<1x8x8x8xbf16>
    %63 = vector.shape_cast %62 : vector<1x8x8x8xbf16> to vector<8x8x8xbf16>
    %64 = arith.extf %63 : vector<8x8x8xbf16> to vector<8x8x8xf32>
    %65 = vector.shape_cast %64 : vector<8x8x8xf32> to vector<64x8xf32>
    %c7 = arith.constant 7 : index
    %c0_59 = arith.constant 0 : index
    %c0_60 = arith.constant 0 : index
    %66 = vector.load %arg2[%c7, %c0_59, %c0_60] : memref<9x8x8xf32, #tpu.memory_space<vmem>>, vector<1x8x8xf32>
    %67 = vector.shape_cast %66 : vector<1x8x8xf32> to vector<8x8xf32>
    %cst_61 = arith.constant dense<0.000000e+00> : vector<64x8xf32>
    %68 = tpu.matmul %65, %67, %cst_61 {dimension_numbers = #tpu.dot_dimension_numbers<[1], [0], [0], [1], [0, 0, 1, 1], [], []>} : vector<64x8xf32>, vector<8x8xf32>, vector<64x8xf32> -> vector<64x8xf32>
    %69 = arith.addf %61, %68 : vector<64x8xf32>
    %c0_62 = arith.constant 0 : index
    %c2_63 = arith.constant 2 : index
    %c2_64 = arith.constant 2 : index
    %c0_65 = arith.constant 0 : index
    %70 = vector.load %arg1[%c0_62, %c2_63, %c2_64, %c0_65] : memref<1x10x10x8xbf16, #tpu.memory_space<vmem>>, vector<1x8x8x8xbf16>
    %71 = vector.shape_cast %70 : vector<1x8x8x8xbf16> to vector<8x8x8xbf16>
    %72 = arith.extf %71 : vector<8x8x8xbf16> to vector<8x8x8xf32>
    %73 = vector.shape_cast %72 : vector<8x8x8xf32> to vector<64x8xf32>
    %c8 = arith.constant 8 : index
    %c0_66 = arith.constant 0 : index
    %c0_67 = arith.constant 0 : index
    %74 = vector.load %arg2[%c8, %c0_66, %c0_67] : memref<9x8x8xf32, #tpu.memory_space<vmem>>, vector<1x8x8xf32>
    %75 = vector.shape_cast %74 : vector<1x8x8xf32> to vector<8x8xf32>
    %cst_68 = arith.constant dense<0.000000e+00> : vector<64x8xf32>
    %76 = tpu.matmul %73, %75, %cst_68 {dimension_numbers = #tpu.dot_dimension_numbers<[1], [0], [0], [1], [0, 0, 1, 1], [], []>} : vector<64x8xf32>, vector<8x8xf32>, vector<64x8xf32> -> vector<64x8xf32>
    %77 = arith.addf %69, %76 : vector<64x8xf32>
    %c0_69 = arith.constant 0 : index
    %c0_70 = arith.constant 0 : index
    %78 = vector.load %arg5[%c0_69, %c0_70] : memref<1x8xf32, #tpu.memory_space<vmem>>, vector<1x8xf32>
    %79 = vector.broadcast %78 : vector<1x8xf32> to vector<64x8xf32>
    %80 = arith.addf %77, %79 : vector<64x8xf32>
    %cst_71 = arith.constant 0.000000e+00 : f32
    %81 = vector.broadcast %cst_71 : f32 to vector<64x8xf32>
    %82 = arith.maximumf %80, %81 : vector<64x8xf32>
    %83 = vector.shape_cast %82 : vector<64x8xf32> to vector<8x8x8xf32>
    %84 = arith.truncf %83 : vector<8x8x8xf32> to vector<8x8x8xbf16>
    %c0_72 = arith.constant 0 : index
    %c0_73 = arith.constant 0 : index
    %c0_74 = arith.constant 0 : index
    %c0_75 = arith.constant 0 : index
    %85 = vector.load %arg6[%c0_72, %c0_73, %c0_74, %c0_75] : memref<1x8x8x8xbf16, #tpu.memory_space<vmem>>, vector<1x8x8x8xbf16>
    %86 = vector.shape_cast %85 : vector<1x8x8x8xbf16> to vector<8x8x8xbf16>
    %87 = vector.shape_cast %84 : vector<8x8x8xbf16> to vector<1x8x8x8xbf16>
    tpu.vector_store %arg6[%c0_72, %c0_73, %c0_74, %c0_75], %87 {strides = array<i32>} : memref<1x8x8x8xbf16, #tpu.memory_space<vmem>>, vector<1x8x8x8xbf16>,
    return
  }
  func.func @transform_0(%arg0: i32) -> (i32, i32, i32, i32) {
    %c0_i32 = arith.constant 0 : i32
    %c0_i32_0 = arith.constant 0 : i32
    %c0_i32_1 = arith.constant 0 : i32
    %c0_i32_2 = arith.constant 0 : i32
    return %arg0, %c0_i32, %c0_i32_0, %c0_i32_1 : i32, i32, i32, i32
  }
  func.func @transform_1(%arg0: i32) -> (i32, i32, i32) {
    %c0_i32 = arith.constant 0 : i32
    %c0_i32_0 = arith.constant 0 : i32
    %c0_i32_1 = arith.constant 0 : i32
    %c0_i32_2 = arith.constant 0 : i32
    return %c0_i32, %c0_i32_0, %c0_i32_1 : i32, i32, i32
  }
  func.func @transform_2(%arg0: i32) -> (i32, i32, i32, i32) {
    %c0_i32 = arith.constant 0 : i32
    %c0_i32_0 = arith.constant 0 : i32
    %c0_i32_1 = arith.constant 0 : i32
    %c0_i32_2 = arith.constant 0 : i32
    return %arg0, %c0_i32, %c0_i32_0, %c0_i32_1 : i32, i32, i32, i32
  }
  func.func @transform_3(%arg0: i32) -> (i32, i32) {
    %c0_i32 = arith.constant 0 : i32
    %c0_i32_0 = arith.constant 0 : i32
    %c0_i32_1 = arith.constant 0 : i32
    return %c0_i32, %c0_i32_0 : i32, i32
  }
  func.func @transform_4(%arg0: i32) -> (i32, i32) {
    %c0_i32 = arith.constant 0 : i32
    %c0_i32_0 = arith.constant 0 : i32
    %c0_i32_1 = arith.constant 0 : i32
    return %c0_i32, %c0_i32_0 : i32, i32
  }
  func.func @transform_5(%arg0: i32) -> (i32, i32, i32, i32) {
    %c0_i32 = arith.constant 0 : i32
    %c0_i32_0 = arith.constant 0 : i32
    %c0_i32_1 = arith.constant 0 : i32
    %c0_i32_2 = arith.constant 0 : i32
    return %arg0, %c0_i32, %c0_i32_0, %c0_i32_1 : i32, i32, i32, i32
  }
}

</mosaic_0001>

<bundles_post_ra>
// kernel: residual_block_forward.3
= control target key start
LH: loop header
LB: loop body
LE: loop exit
PB: predicated region body
PF: predicated region fallthrough
CT: control target
= control target key end

     0   :  { %s2640_s18 = smov 0   ;;  %s3159_s0 = inlined_call_operand.vmem [shape: bf16[2,10,10,8], index: 0, kind: input, shape index: {}]   ;;  %s3160_s1 = inlined_call_operand.vmem [shape: f32[9,8,8], index: 1, kind: input, shape index: {}]   ;;  %s3161_s2 = inlined_call_operand.vmem [shape: bf16[2,8,8,8], index: 2, kind: input, shape index: {}]   ;;  %s3162_s3 = inlined_call_operand.vmem [shape: f32[8,8], index: 3, kind: input, shape index: {}]   ;;  %s3163_s4 = inlined_call_operand.vmem [shape: f32[1,8], index: 4, kind: input, shape index: {}]   ;;  %s3164_s5 = inlined_call_operand.vmem [shape: bf16[2,8,8,8], index: 5, kind: output, shape index: {}]  }
   0x1 LB: > { %s2105_s19 = sadd.s32 4294967295, %s2608_s18   ;;  %p2109_p0 = scmp.ge.s32.totalorder %s2608_s18, 1  ;;  %s2608_s18 = sphi %s2640_s18, %s15_s18  }
   0x2   : > { %p197_p1 = scmp.lt.s32.totalorder %s2608_s18, 3 }
   0x4   : > { %p198_p2 = pnand %p2109_p0, %p197_p1 }
   0x5   : > { %v278_v0 = vld [vmem:[%s3160_s1] sm:$0xff] (!%p198_p2)  ;;  %p230_p3 = scmp.lt.s32.totalorder (!%p198_p2), %s2105_s19, 1  ;;  %v2660_v3 = vld [vmem:[%s3160_s1 + $0x28] sm:$0xff] (!%p198_p2)  ;;  %vm279_vm0 = vcmask (!%p198_p2), 64512   ;;  %vm586_vm1 = vcmask (!%p198_p2), 1046528   ;;  %v2749_v48 = vld [vmem:[%s3160_s1 + $0x30] sm:$0xff] (!%p198_p2) }
   0x6   : > { %201 = sbr.rel (%p198_p2) target bundleno = 323 (0x143), region = 40  ;;  %v2182_v1 = vld [vmem:[%s3160_s1 + $0x20] sm:$0xff] (!%p198_p2)  ;;  %2381 = vmatprep.subr.mxu1 (!%p198_p2), %v278_v0  ;;  %v2693_v14 = vld [vmem:[%s3160_s1 + $0x8] sm:$0xff] (!%p198_p2)  ;;  %vm766_vm2 = vcmask (!%p198_p2), 1045504   ;;  %vm2029_vm3 = vcmask (!%p198_p2), 60416  }
   0x7   : > { %v261_v2 = vld [vmem:[%s3162_s3] sm:$0xff] (!%p198_p2)  ;;  %2451 = vmatprep.subr.mxu0 (!%p198_p2), %v2182_v1  ;;  %2382 = vmatpush3.msra.mxu1 (!%p198_p2), %v278_v0 }
   0x8   : > { %2452 = vmatpush3.msra.mxu0 (!%p198_p2), %v2182_v1  ;;  %2395 = vmatprep.subr.mxu1 (!%p198_p2), %v261_v2 }
   0x9   : > { %2465 = vmatprep.subr.mxu0 (!%p198_p2), %v2660_v3 }
   0xd   : > { %s3166_s19 = smov (!%p230_p3, %s2105_s19), 1 }
   0xe   : > { %s2593_s28 = smul.u32 80, %s3166_s19  ;;  %s2270_s29 = sshll.u32 %s3166_s19, 5 }
   0xf   : > { %s2677_s10 = scalar_lea.vmem %s3161_s2, %s2270_s29  ;;  %s3138_s30 = scalar_lea.vmem %s3164_s5, %s2270_s29 }
  0x10   : > { %s2670_s7 = scalar_lea.vmem %s3159_s0, %s2593_s28  ;;  %v2703_v20 = vld [vmem:[%s2677_s10] sm:$0xff]  }
  0x11   : > { %v262_v4 = vld [vmem:[%s2670_s7] ss:$8 sps:$4 sm:$0xff]   ;;  %v2682_v6 = vld [vmem:[%s2670_s7 + $0xc] sm:$0x1]  ;;  %v2168_v11 = vld [vmem:[%s2670_s7 + $0x10] ss:$8 sps:$4 sm:$0xff]   ;;  %v2274_v43 = vunpack.c.l.bf16 %v2703_v20 }
  0x12   : > { %v2166_v5 = vld [vmem:[%s2670_s7 + $0x8] ss:$8 sps:$4 sm:$0xff]   ;;  %v270_v7 = vunpack.c.l.bf16 %v262_v4  ;;  %v271_v8 = vunpack.c.h.bf16 %v262_v4  ;;  %v1095_v10 = vunpack.c.l.bf16 %v2682_v6  ;;  %v2687_v12 = vld [vmem:[%s2670_s7 + $0x14] sm:$0x1]  ;;  %v2170_v13 = vld [vmem:[%s2670_s7 + $0x18] ss:$8 sps:$4 sm:$0xff]   ;;  %v1096_v16 = vunpack.c.l.bf16 %v2168_v11 }
  0x13   : > { %v1094_v9 = vunpack.c.l.bf16 %v2166_v5  ;;  %v272_v15 = vunpack.c.h.bf16 %v2166_v5  ;;  %v1097_v17 = vunpack.c.l.bf16 %v2687_v12  ;;  %v2697_v18 = vld [vmem:[%s2670_s7 + $0x1c] sm:$0x1]  ;;  %v2700_v19 = vld [vmem:[%s2670_s7 + $0x20] ss:$8 sps:$4 sm:$0xff]   ;;  %v1098_v23 = vunpack.c.l.bf16 %v2170_v13  ;;  %v2710_v25 = vld [vmem:[%s2670_s7 + $0x24] sm:$0x1] }
  0x14   : > { %2383 = vmatprep.mubr.msk.f32.mxu1 %vm279_vm0, %v270_v7  ;;  %v1127_v22 = vrot.slane %v1095_v10, 1  ;;  %v1099_v24 = vunpack.c.l.bf16 %v2697_v18  ;;  %v2713_v26 = vld [vmem:[%s2670_s7 + $0x28] ss:$8 sps:$4 sm:$0xff]   ;;  %v1129_v27 = vrot.slane %v1096_v16, 1  ;;  %v273_v29 = vunpack.c.h.bf16 %v2168_v11  ;;  %v2719_v31 = vld [vmem:[%s2670_s7 + $0x2c] sm:$0x1] }
  0x15   : > { %v1126_v21 = vrot.slane %v1094_v9, 1  ;;  %2384 = vmatmul.mubr.msk.f32.vlgmr.msra.gmra.mrb[0].mxu1 %vm279_vm0, %v271_v8  ;;  %v1130_v28 = vrot.slane %v1097_v17, 1  ;;  %v274_v30 = vunpack.c.h.bf16 %v2170_v13  ;;  %v1132_v33 = vrot.slane %v1098_v23, 1  ;;  %v2727_v36 = vld [vmem:[%s2670_s7 + $0x30] ss:$8 sps:$4 sm:$0xff]  }
  0x16   : > { %2386 = vmatprep.mubr.msk.f32.mxu1 %vm279_vm0, %v272_v15  ;;  %2396 = vmatpush3.msra.mxu1 %v261_v2  ;;  %v1133_v34 = vrot.slane %v1099_v24, 1  ;;  %v1100_v35 = vunpack.c.l.bf16 %v2700_v19  ;;  %v2730_v37 = vld [vmem:[%s2670_s7 + $0x34] sm:$0x1]  ;;  %v1101_v39 = vunpack.c.l.bf16 %v2710_v25  ;;  %v1102_v40 = vunpack.c.l.bf16 %v2713_v26  ;;  %v2178_v41 = vld [vmem:[%s2670_s7 + $0x38] ss:$8 sps:$4 sm:$0xff]  }
  0x17   : > { %v1128_v32 = vsel %vm586_vm1, %v1126_v21, %v1127_v22  ;;  %v1131_v38 = vsel %vm586_vm1, %v1129_v27, %v1130_v28  ;;  %v2738_v42 = vld [vmem:[%s2670_s7 + $0x3c] sm:$0x1]  ;;  %2409 = vmatprep.subr.mxu1 %v2693_v14  ;;  %v275_v46 = vunpack.c.h.bf16 %v2700_v19  ;;  %v1103_v47 = vunpack.c.l.bf16 %v2719_v31  ;;  %v2758_v53 = vld [vmem:[%s2670_s7 + $0x44] sm:$0x1]  ;;  %v2191_v58 = vld [vmem:[%s2670_s7 + $0x8] sm:$0xe] }
  0x18   : > { %2453 = vmatprep.mubr.msk.f32.mxu0 %vm279_vm0, %v1128_v32  ;;  %v1134_v44 = vsel %vm586_vm1, %v1132_v33, %v1133_v34  ;;  %v1135_v45 = vrot.slane %v1100_v35, 1  ;;  %v1136_v49 = vrot.slane %v1101_v39, 1  ;;  %v1138_v50 = vrot.slane %v1102_v40, 1  ;;  %v2192_v63 = vld [vmem:[%s2670_s7 + $0x10] sm:$0xe]  ;;  %v2288_v22 = vld [vmem:[%s2677_s10 + $0x8] sm:$0xff]  }
  0x19   : > { %2454 = vmatmul.mubr.msk.f32.vlgmr.msra.gmra.mrb[0].mxu0 %vm279_vm0, %v1131_v38  ;;  %2387 = vmatmul.mubr.msk.f32.gmra.mrb[2].mxu1 %vm279_vm0, %v273_v29  ;;  %v1104_v51 = vunpack.c.l.bf16 %v2727_v36  ;;  %v1105_v52 = vunpack.c.l.bf16 %v2730_v37  ;;  %v1139_v54 = vrot.slane %v1103_v47, 1  ;;  %v276_v55 = vunpack.c.h.bf16 %v2713_v26  ;;  %v2193_v4 = vld [vmem:[%s2670_s7 + $0x18] sm:$0xe]  ;;  %v2194_v11 = vld [vmem:[%s2670_s7 + $0x20] sm:$0xe] }
  0x1a   : > { %2466 = vmatpush3.msra.mxu0 %v2660_v3  ;;  %2456 = vmatprep.mubr.msk.f32.mxu0 %vm279_vm0, %v1134_v44  ;;  %v1106_v56 = vunpack.c.l.bf16 %v2178_v41  ;;  %v1107_v57 = vunpack.c.l.bf16 %v2738_v42  ;;  %v1137_v59 = vsel %vm586_vm1, %v1135_v45, %v1136_v49  ;;  %v1108_v62 = vunpack.c.h.bf16 %v2178_v41  ;;  %v2195_v26 = vld [vmem:[%s2670_s7 + $0x28] sm:$0xe]  ;;  %v2197_v12 = vld [vmem:[%s2670_s7 + $0x38] sm:$0xe]  ;;  %v2815_v44 = vld [vmem:[%s2670_s7 + $0x4] sm:$0x1] }
  0x1b   : > { %2389 = vmatprep.mubr.msk.f32.mxu1 %vm279_vm0, %v274_v30  ;;  %v1141_v60 = vrot.slane %v1104_v51, 1  ;;  %v1142_v61 = vrot.slane %v1105_v52, 1  ;;  %2479 = vmatprep.subr.mxu0 %v2749_v48  ;;  %v1140_v0 = vsel %vm586_vm1, %v1138_v50, %v1139_v54  ;;  %v1109_v3 = vunpack.c.l.bf16 %v2758_v53  ;;  %v2196_v30 = vld [vmem:[%s2670_s7 + $0x30] sm:$0xe]  ;;  %v2198_v49 = vld [vmem:[%s2670_s7 + $0x40] sm:$0xe] }
  0x1c   : > { %v1144_v1 = vrot.slane %v1106_v56, 1  ;;  %v1145_v2 = vrot.slane %v1107_v57, 1  ;;  %v277_v7 = vunpack.c.h.bf16 %v2727_v36  ;;  %v1147_v8 = vrot.slane %v1108_v62, 1  ;;  %v2289_v36 = vld [vmem:[%s2677_s10 + $0x10] sm:$0xff]   ;;  %v2826_v50 = vld [vmem:[%s2670_s7 + $0xc] sm:$0x1] }
  0x1d   : > { %2457 = vmatmul.mubr.msk.f32.gmra.mrb[2].mxu0 %vm279_vm0, %v1137_v59  ;;  %2390 = vmatmul.mubr.msk.f32.gmra.mrb[4].mxu1 %vm279_vm0, %v275_v46  ;;  %v1143_v5 = vsel %vm586_vm1, %v1141_v60, %v1142_v61  ;;  %v1289_v9 = vunpack.c.l.bf16 %v2191_v58  ;;  %v1148_v15 = vrot.slane %v1109_v3, 1  ;;  %v1306_v16 = vrot.slane %v1095_v10, 2  ;;  %v542_v59 = vld [vmem:[%s2670_s7 + $0x10] ss:$8 sps:$4 sm:$0xff]   ;;  %v2834_v60 = vld [vmem:[%s2670_s7 + $0x14] sm:$0x1] }
  0x1e   : > { %2459 = vmatprep.mubr.msk.f32.mxu0 %vm279_vm0, %v1140_v0  ;;  %2392 = vmatprep.mubr.msk.f32.mxu1 %vm279_vm0, %v276_v55  ;;  %v1146_v13 = vsel %vm586_vm1, %v1144_v1, %v1145_v2  ;;  %v1290_v19 = vunpack.c.l.bf16 %v2192_v63  ;;  %v1291_v23 = vunpack.c.l.bf16 %v2193_v4  ;;  %v1292_v27 = vunpack.c.l.bf16 %v2194_v11  ;;  %v2290_v55 = vld [vmem:[%s2677_s10 + $0x18] sm:$0xff]   ;;  %v546_v11 = vld [vmem:[%s2670_s7 + $0x20] ss:$8 sps:$4 sm:$0xff]  }
  0x1f   : > { %v1305_v21 = vrot.slane %v1289_v9, 2  ;;  %v1309_v28 = vrot.slane %v1097_v17, 2  ;;  %v2275_v6 = vunpack.c.h.bf16 %v2703_v20  ;;  %v1149_v10 = vsel %vm586_vm1, %v1147_v8, %v1148_v15  ;;  %v2808_v20 = vld [vmem:[%s3160_s1 + $0x10] sm:$0xff]  ;;  %v2845_v62 = vld [vmem:[%s3160_s1 + $0x38] sm:$0xff] }
  0x20   : > { %v1308_v29 = vrot.slane %v1290_v19, 2  ;;  %v2278_v33 = vunpack.c.l.bf16 %v2288_v22  ;;  %v1293_v34 = vunpack.c.l.bf16 %v2195_v26  ;;  %v1311_v17 = vrot.slane %v1291_v23, 2  ;;  %v2208_v53 = vld [vmem:[%s2670_s7 + $0x10] ss:$8 sps:$4 sm:$0xff]  }
  0x21   : > { %2460 = vmatmul.mubr.msk.f32.gmra.mrb[4].mxu0 %vm279_vm0, %v1143_v5  ;;  %2393 = vmatmul.mubr.msk.f32.gmra.mrb[6].mxu1 %vm279_vm0, %v277_v7  ;;  %v1307_v32 = vsel %vm766_vm2, %v1305_v21, %v1306_v16  ;;  %v1312_v35 = vrot.slane %v1099_v24, 2  ;;  %v1314_v38 = vrot.slane %v1292_v27, 2  ;;  %v1315_v40 = vrot.slane %v1101_v39, 2  ;;  %v2858_v5 = vld [vmem:[%s2670_s7 + $0x1c] sm:$0x1] }
  0x22   : > { %2462 = vmatprep.mubr.msk.f32.mxu0 %vm279_vm0, %v1146_v13  ;;  %2397 = vmatprep.mubr.msk.f32.mxu1 %vm279_vm0, %v2274_v43  ;;  %v1294_v41 = vunpack.c.l.bf16 %v2196_v30  ;;  %v538_v43 = vld [vmem:[%s2670_s7] ss:$8 sps:$4 sm:$0xff]   ;;  %v1310_v18 = vsel %vm766_vm2, %v1308_v29, %v1309_v28  ;;  %v2279_v24 = vunpack.c.h.bf16 %v2288_v22  ;;  %v1295_v45 = vunpack.c.l.bf16 %v2197_v12  ;;  %v2866_v13 = vld [vmem:[%s2670_s7 + $0x24] sm:$0x1]  ;;  %v2879_v27 = vld [vmem:[%s2670_s7 + $0x2c] sm:$0x1] }
  0x23   : > { %v2282_v25 = vunpack.c.l.bf16 %v2289_v36  ;;  %v1317_v39 = vrot.slane %v1293_v34, 2  ;;  %v1318_v46 = vrot.slane %v1103_v47, 2  ;;  %v1313_v51 = vsel %vm766_vm2, %v1311_v17, %v1312_v35  ;;  %v550_v29 = vld [vmem:[%s2670_s7 + $0x30] ss:$8 sps:$4 sm:$0xff]   ;;  %v2886_v30 = vld [vmem:[%s2670_s7 + $0x34] sm:$0x1] }
  0x24   : > { %v2283_v54 = vunpack.c.h.bf16 %v2289_v36  ;;  %v554_v56 = vunpack.c.l.bf16 %v538_v43  ;;  %v555_v58 = vunpack.c.l.bf16 %v2815_v44  ;;  %v1320_v31 = vrot.slane %v1294_v41, 2 }
  0x25   : > { %2463 = vmatmul.mubr.msk.f32.gmra.mrb[6].mxu0 %vm279_vm0, %v1149_v10  ;;  %2398 = vmatmul.mubr.msk.f32.vlgmr.msra.gmra.mrb[0].mxu1 %vm279_vm0, %v2275_v6  ;;  %v1321_v47 = vrot.slane %v1105_v52, 2  ;;  %v1324_v61 = vrot.slane %v1107_v57, 2  ;;  %v1323_v63 = vrot.slane %v1295_v45, 2  ;;  %v1296_v0 = vunpack.c.l.bf16 %v2198_v49  ;;  %v2902_v45 = vld [vmem:[%s2670_s7 + $0x3c] sm:$0x1] }
  0x26   : > { %2467 = vmatprep.mubr.msk.f32.mxu0 %vm279_vm0, %v1307_v32  ;;  %2400 = vmatprep.mubr.msk.f32.mxu1 %vm279_vm0, %v2278_v33  ;;  %v556_v1 = vunpack.c.h.bf16 %v538_v43  ;;  %v557_v37 = vunpack.c.l.bf16 %v2826_v50  ;;  %v1319_v42 = vsel %vm766_vm2, %v1317_v39, %v1318_v46  ;;  %v2286_v52 = vunpack.c.l.bf16 %v2290_v55  ;;  %v743_v46 = vld [vmem:[%s2670_s7 + $0x8] sm:$0xe]  ;;  %v2910_v49 = vld [vmem:[%s3160_s1 + $0x18] sm:$0xff] }
  0x27   : > { %2410 = vmatpush3.msra.mxu1 %v2693_v14  ;;  %v1316_v14 = vsel %vm766_vm2, %v1314_v38, %v1315_v40  ;;  %v558_v57 = vunpack.c.l.bf16 %v542_v59  ;;  %v559_v2 = vunpack.c.l.bf16 %v2834_v60  ;;  %v588_v4 = vrot.slane %v555_v58, 1  ;;  %v2210_v40 = vld [vmem:[%s2670_s7 + $0x20] ss:$8 sps:$4 sm:$0xff]  }
  0x28   : > { %2423 = vmatprep.subr.mxu1 %v2808_v20  ;;  %v1322_v7 = vsel %vm766_vm2, %v1320_v31, %v1321_v47  ;;  %v2287_v8 = vunpack.c.h.bf16 %v2290_v55  ;;  %v1327_v9 = vrot.slane %v1109_v3, 2  ;;  %v1325_v15 = vsel %vm766_vm2, %v1323_v63, %v1324_v61  ;;  %v2926_v31 = vld [vmem:[%s2670_s7 + $0x30] ss:$8 sps:$4 sm:$0xff]  }
  0x29   : > { %2468 = vmatmul.mubr.msk.f32.vlgmr.msra.gmra.mrb[0].mxu0 %vm279_vm0, %v1310_v18  ;;  %2401 = vmatmul.mubr.msk.f32.gmra.mrb[2].mxu1 %vm279_vm0, %v2279_v24  ;;  %v1326_v16 = vrot.slane %v1296_v0, 2  ;;  %v590_v19 = vrot.slane %v556_v1, 1  ;;  %v591_v21 = vrot.slane %v557_v37, 1  ;;  %v593_v3 = vrot.slane %v558_v57, 1  ;;  %v744_v0 = vld [vmem:[%s2670_s7 + $0x10] sm:$0xe] }
  0x2a   : > { %2480 = vmatpush3.msra.mxu0 %v2749_v48  ;;  %2470 = vmatprep.mubr.msk.f32.mxu0 %vm279_vm0, %v1313_v51  ;;  %v587_v48 = vrot.slane %v554_v56, 1  ;;  %v594_v22 = vrot.slane %v559_v2, 1  ;;  %v560_v23 = vunpack.c.h.bf16 %v542_v59  ;;  %v561_v26 = vunpack.c.l.bf16 %v2858_v5  ;;  %v2917_v56 = vld [vmem:[%s2670_s7 + $0x10] ss:$8 sps:$4 sm:$0xff]   ;;  %v2920_v59 = vld [vmem:[%s2670_s7 + $0x14] sm:$0x1] }
  0x2b   : > { %2403 = vmatprep.mubr.msk.f32.mxu1 %vm279_vm0, %v2282_v25  ;;  %2493 = vmatprep.subr.mxu0 %v2845_v62  ;;  %v562_v6 = vunpack.c.l.bf16 %v546_v11  ;;  %v563_v10 = vunpack.c.l.bf16 %v2866_v13  ;;  %v1328_v32 = vsel %vm766_vm2, %v1326_v16, %v1327_v9  ;;  %v1469_v33 = vunpack.c.l.bf16 %v2208_v53  ;;  %v742_v25 = vld [vmem:[%s2670_s7] sm:$0xe]  ;;  %v3007_v5 = vld [vmem:[%s2670_s7 + $0x3c] sm:$0x1] }
  0x2c   : > { %v589_v28 = vsel %vm586_vm1, %v587_v48, %v588_v4  ;;  %v564_v34 = vunpack.c.h.bf16 %v546_v11  ;;  %v565_v12 = vunpack.c.l.bf16 %v2879_v27  ;;  %v592_v17 = vsel %vm586_vm1, %v590_v19, %v591_v21  ;;  %v2936_v48 = vld [vmem:[%s2670_s7 + $0x40] ss:$8 sps:$4 sm:$0xff]   ;;  %v2951_v19 = vld [vmem:[%s2670_s7 + $0x1c] sm:$0x1] }
  0x2d   : > { %2471 = vmatmul.mubr.msk.f32.gmra.mrb[2].mxu0 %vm279_vm0, %v1316_v14  ;;  %2404 = vmatmul.mubr.msk.f32.gmra.mrb[4].mxu1 %vm279_vm0, %v2283_v54  ;;  %v595_v35 = vsel %vm586_vm1, %v593_v3, %v594_v22  ;;  %v596_v36 = vrot.slane %v560_v23, 1  ;;  %v597_v38 = vrot.slane %v561_v26, 1  ;;  %v599_v41 = vrot.slane %v562_v6, 1  ;;  %v745_v22 = vld [vmem:[%s2670_s7 + $0x18] sm:$0xe] }
  0x2e   : > { %2473 = vmatprep.mubr.msk.f32.mxu0 %vm279_vm0, %v1319_v42  ;;  %2406 = vmatprep.mubr.msk.f32.mxu1 %vm279_vm0, %v2286_v52  ;;  %v600_v43 = vrot.slane %v563_v10, 1  ;;  %v566_v18 = vunpack.c.l.bf16 %v550_v29  ;;  %v567_v24 = vunpack.c.l.bf16 %v2886_v30  ;;  %v1470_v39 = vunpack.c.h.bf16 %v2208_v53 }
  0x2f   : > { %v1471_v51 = vunpack.c.l.bf16 %v2210_v40  ;;  %v602_v54 = vrot.slane %v564_v34, 1  ;;  %v603_v55 = vrot.slane %v565_v12, 1  ;;  %v598_v14 = vsel %vm586_vm1, %v596_v36, %v597_v38  ;;  %v2976_v36 = vld [vmem:[%s2670_s7 + $0x2c] sm:$0x1] }
  0x30   : > { %v568_v47 = vunpack.c.h.bf16 %v550_v29  ;;  %v569_v61 = vunpack.c.l.bf16 %v2902_v45  ;;  %v750_v63 = vunpack.c.l.bf16 %v742_v25  ;;  %v601_v1 = vsel %vm586_vm1, %v599_v41, %v600_v43  ;;  %v747_v41 = vld [vmem:[%s2670_s7 + $0x28] sm:$0xe] }
  0x31   : > { %2474 = vmatmul.mubr.msk.f32.gmra.mrb[4].mxu0 %vm279_vm0, %v1322_v7  ;;  %2407 = vmatmul.mubr.msk.f32.gmra.mrb[6].mxu1 %vm279_vm0, %v2287_v8  ;;  %v605_v42 = vrot.slane %v566_v18, 1  ;;  %v606_v52 = vrot.slane %v567_v24, 1  ;;  %v751_v57 = vunpack.c.l.bf16 %v743_v46  ;;  %v1632_v4 = vunpack.c.l.bf16 %v2917_v56  ;;  %v2943_v8 = vld [vmem:[%s3160_s1 + $0x40] sm:$0xff] }
  0x32   : > { %2476 = vmatprep.mubr.msk.f32.mxu0 %vm279_vm0, %v1325_v15  ;;  %2411 = vmatprep.mubr.msk.f32.mxu1 %vm279_vm0, %v589_v28  ;;  %v1633_v7 = vunpack.c.l.bf16 %v2920_v59  ;;  %v604_v9 = vsel %vm586_vm1, %v602_v54, %v603_v55  ;;  %v1473_v11 = vunpack.c.l.bf16 %v2926_v31  ;;  %v1474_v15 = vunpack.c.h.bf16 %v2926_v31  ;;  %v2992_v55 = vld [vmem:[%s2670_s7 + $0x34] sm:$0x1] }
  0x33   : > { %v752_v16 = vunpack.c.l.bf16 %v744_v0  ;;  %v608_v21 = vrot.slane %v568_v47, 1  ;;  %v767_v53 = vrot.slane %v750_v63, 2  ;;  %v768_v3 = vrot.slane %v555_v58, 2  ;;  %v748_v63 = vld [vmem:[%s2670_s7 + $0x30] sm:$0xe] }
  0x34   : > { %v607_v23 = vsel %vm586_vm1, %v605_v42, %v606_v52  ;;  %v1475_v28 = vunpack.c.l.bf16 %v2936_v48  ;;  %v770_v6 = vrot.slane %v751_v57, 2  ;;  %v771_v29 = vrot.slane %v557_v37, 2 }
  0x35   : > { %2477 = vmatmul.mubr.msk.f32.gmra.mrb[6].mxu0 %vm279_vm0, %v1328_v32  ;;  %2412 = vmatmul.mubr.msk.f32.vlgmr.msra.gmra.mrb[0].mxu1 %vm279_vm0, %v592_v17  ;;  %v2229_v32 = vld [vmem:[%s2670_s7 + $0x20] ss:$8 sps:$4 sm:$0xff]   ;;  %v1476_v44 = vunpack.c.h.bf16 %v2936_v48  ;;  %v1664_v58 = vrot.slane %v1632_v4, 1  ;;  %v1665_v34 = vrot.slane %v1633_v7, 1  ;;  %v1634_v17 = vunpack.c.h.bf16 %v2917_v56  ;;  %v749_v4 = vld [vmem:[%s2670_s7 + $0x38] sm:$0xe] }
  0x36   : > { %2481 = vmatprep.mubr.msk.f32.mxu0 %vm279_vm0, %v1469_v33  ;;  %2414 = vmatprep.mubr.msk.f32.mxu1 %vm279_vm0, %v595_v35  ;;  %v2967_v33 = vld [vmem:[%s2670_s7 + $0x24] sm:$0x1]  ;;  %v746_v35 = vld [vmem:[%s2670_s7 + $0x20] sm:$0xe]  ;;  %v773_v50 = vrot.slane %v752_v16, 2  ;;  %v774_v37 = vrot.slane %v559_v2, 2  ;;  %v1635_v38 = vunpack.c.l.bf16 %v2951_v19  ;;  %v769_v18 = vsel %vm766_vm2, %v767_v53, %v768_v3 }
  0x37   : > { %2424 = vmatpush3.msra.mxu1 %v2808_v20  ;;  %v1472_v20 = vunpack.c.h.bf16 %v2210_v40  ;;  %v753_v40 = vunpack.c.l.bf16 %v745_v22  ;;  %v1636_v25 = vunpack.c.l.bf16 %v2229_v32  ;;  %v772_v46 = vsel %vm766_vm2, %v770_v6, %v771_v29  ;;  %v2233_v2 = vld [vmem:[%s2670_s7 + $0x30] ss:$8 sps:$4 sm:$0xff]   ;;  %v3020_v16 = vld [vmem:[%s2670_s7 + $0x44] sm:$0x1] }
  0x38   : > { %2437 = vmatprep.subr.mxu1 %v2910_v49  ;;  %v1638_v54 = vunpack.c.h.bf16 %v2229_v32  ;;  %v1639_v60 = vunpack.c.l.bf16 %v2976_v36  ;;  %v1666_v56 = vsel %vm586_vm1, %v1664_v58, %v1665_v34  ;;  %v777_v31 = vrot.slane %v561_v26, 2  ;;  %v3037_v32 = vld [vmem:[%s2670_s7 + $0x10] ss:$56 sps:$4 sm:$0xff]  }
  0x39   : > { %2482 = vmatmul.mubr.msk.f32.vlgmr.msra.gmra.mrb[0].mxu0 %vm279_vm0, %v1470_v39  ;;  %2415 = vmatmul.mubr.msk.f32.gmra.mrb[2].mxu1 %vm279_vm0, %v598_v14  ;;  %v1637_v39 = vunpack.c.l.bf16 %v2967_v33  ;;  %v1667_v14 = vrot.slane %v1634_v17, 1  ;;  %v755_v47 = vunpack.c.l.bf16 %v747_v41  ;;  %v775_v0 = vsel %vm766_vm2, %v773_v50, %v774_v37 }
  0x3a   : > { %2494 = vmatpush3.msra.mxu0 %v2845_v62  ;;  %2484 = vmatprep.mubr.msk.f32.mxu0 %vm279_vm0, %v1471_v51  ;;  %v609_v62 = vrot.slane %v569_v61, 1  ;;  %v754_v51 = vunpack.c.l.bf16 %v746_v35  ;;  %v776_v42 = vrot.slane %v753_v40, 2  ;;  %v780_v52 = vrot.slane %v563_v10, 2  ;;  %v2250_v35 = vld [vmem:[%s2670_s7 + $0x10] sm:$0xe] }
  0x3b   : > { %2417 = vmatprep.mubr.msk.f32.mxu1 %vm279_vm0, %v601_v1  ;;  %2507 = vmatprep.subr.mxu0 %v2943_v8  ;;  %v1668_v1 = vrot.slane %v1635_v38, 1  ;;  %v1670_v26 = vrot.slane %v1636_v25, 1  ;;  %v1671_v57 = vrot.slane %v1637_v39, 1  ;;  %v1641_v48 = vunpack.c.l.bf16 %v2992_v55 }
  0x3c   : > { %v610_v43 = vsel %vm586_vm1, %v608_v21, %v609_v62  ;;  %v1674_v13 = vrot.slane %v1639_v60, 1  ;;  %v756_v10 = vunpack.c.l.bf16 %v748_v63  ;;  %v782_v21 = vrot.slane %v755_v47, 2  ;;  %v2151_v63 = vld [vmem:[%s2670_s7 + $0x18] ss:$8 sps:$4 sm:$0xff]  }
  0x3d   : > { %2485 = vmatmul.mubr.msk.f32.gmra.mrb[2].mxu0 %vm279_vm0, %v1472_v20  ;;  %2418 = vmatmul.mubr.msk.f32.gmra.mrb[4].mxu1 %vm279_vm0, %v604_v9  ;;  %v1640_v20 = vunpack.c.l.bf16 %v2233_v2  ;;  %v3015_v9 = vld [vmem:[%s2670_s7 + $0x8] ss:$56 sps:$4 sm:$0xff]   ;;  %v783_v62 = vrot.slane %v565_v12, 2  ;;  %v1642_v53 = vunpack.c.h.bf16 %v2233_v2  ;;  %v1643_v3 = vunpack.c.l.bf16 %v3007_v5 }
  0x3e   : > { %2487 = vmatprep.mubr.msk.f32.mxu0 %vm279_vm0, %v1473_v11  ;;  %2420 = vmatprep.mubr.msk.f32.mxu1 %vm279_vm0, %v607_v23  ;;  %v779_v11 = vrot.slane %v754_v51, 2  ;;  %v1669_v22 = vsel %vm586_vm1, %v1667_v14, %v1668_v1  ;;  %v778_v23 = vsel %vm766_vm2, %v776_v42, %v777_v31  ;;  %v1677_v12 = vrot.slane %v1641_v48, 1 }
  0x3f   : > { %v1676_v27 = vrot.slane %v1640_v20, 1  ;;  %v1644_v6 = vunpack.c.h.bf16 %v3015_v9  ;;  %v1645_v29 = vunpack.c.l.bf16 %v3020_v16  ;;  %v1672_v58 = vsel %vm586_vm1, %v1670_v26, %v1671_v57  ;;  %v2253_v57 = vld [vmem:[%s2670_s7 + $0x28] sm:$0xe]  ;;  %v2254_v20 = vld [vmem:[%s2670_s7 + $0x30] sm:$0xe] }
  0x40   : > { %v781_v34 = vsel %vm766_vm2, %v779_v11, %v780_v52  ;;  %v785_v17 = vrot.slane %v756_v10, 2  ;;  %v784_v37 = vsel %vm766_vm2, %v782_v21, %v783_v62  ;;  %v1679_v40 = vrot.slane %v1642_v53, 1 }
  0x41   : > { %2488 = vmatmul.mubr.msk.f32.gmra.mrb[4].mxu0 %vm279_vm0, %v1474_v15  ;;  %2421 = vmatmul.mubr.msk.f32.gmra.mrb[6].mxu1 %vm279_vm0, %v610_v43  ;;  %v1673_v15 = vrot.slane %v1638_v54, 1  ;;  %v1680_v41 = vrot.slane %v1643_v3, 1  ;;  %v789_v30 = vrot.slane %v569_v61, 2  ;;  %v1678_v25 = vsel %vm586_vm1, %v1676_v27, %v1677_v12  ;;  %v2251_v54 = vld [vmem:[%s2670_s7 + $0x18] sm:$0xe] }
  0x42   : > { %2490 = vmatprep.mubr.msk.f32.mxu0 %vm279_vm0, %v1475_v28  ;;  %2425 = vmatprep.mubr.msk.f32.mxu1 %vm279_vm0, %v769_v18  ;;  %v757_v28 = vunpack.c.l.bf16 %v749_v4  ;;  %v1827_v51 = vunpack.c.l.bf16 %v2250_v35  ;;  %v2252_v61 = vld [vmem:[%s2670_s7 + $0x20] sm:$0xe]  ;;  %v1844_v52 = vrot.slane %v1633_v7, 2  ;;  %v932_v4 = vunpack.c.l.bf16 %v3037_v32  ;;  %v2153_v7 = vld [vmem:[%s2670_s7 + $0x28] ss:$8 sps:$4 sm:$0xff]  }
  0x43   : > { %v1675_v50 = vsel %vm586_vm1, %v1673_v15, %v1674_v13  ;;  %v1681_v2 = vsel %vm586_vm1, %v1679_v40, %v1680_v41  ;;  %v1829_v26 = vunpack.c.l.bf16 %v2252_v61  ;;  %v1847_v59 = vrot.slane %v1635_v38, 2 }
  0x44   : > { %v788_v43 = vrot.slane %v757_v28, 2  ;;  %v1843_v42 = vrot.slane %v1827_v51, 2  ;;  %v1830_v13 = vunpack.c.l.bf16 %v2253_v57  ;;  %v1850_v62 = vrot.slane %v1637_v39, 2 }
  0x45   : > { %2491 = vmatmul.mubr.msk.f32.gmra.mrb[6].mxu0 %vm279_vm0, %v1476_v44  ;;  %2426 = vmatmul.mubr.msk.f32.vlgmr.msra.gmra.mrb[0].mxu1 %vm279_vm0, %v772_v46  ;;  %v3040_v44 = vld [vmem:[%s2670_s7 + $0x4c] sm:$0x1]  ;;  %v1682_v46 = vrot.slane %v1644_v6, 1  ;;  %v1849_v21 = vrot.slane %v1829_v26, 2  ;;  %v1831_v53 = vunpack.c.l.bf16 %v2254_v20  ;;  %v934_v28 = vunpack.c.h.bf16 %v2151_v63 }
  0x46   : > { %2495 = vmatprep.mubr.msk.f32.mxu0 %vm279_vm0, %v1666_v56  ;;  %2428 = vmatprep.mubr.msk.f32.mxu1 %vm279_vm0, %v775_v0  ;;  %v1647_v18 = vunpack.c.l.bf16 %v3040_v44  ;;  %v931_v56 = vunpack.c.l.bf16 %v3015_v9  ;;  %v790_v14 = vsel %vm766_vm2, %v788_v43, %v789_v30  ;;  %v1828_v0 = vunpack.c.l.bf16 %v2251_v54  ;;  %v2267_v44 = vld [vmem:[%s3163_s4] ss:$0 sm:$0xff] }
  0x47   : > { %2438 = vmatpush3.msra.mxu1 %v2910_v49  ;;  %v786_v49 = vrot.slane %v567_v24, 2  ;;  %v1646_v24 = vunpack.c.h.bf16 %v3037_v32  ;;  %v933_v9 = vunpack.c.l.bf16 %v2151_v63  ;;  %v1845_v10 = vsel %vm766_vm2, %v1843_v42, %v1844_v52 }
  0x48   : > { %v1686_v47 = vrot.slane %v1647_v18, 1  ;;  %v1846_v15 = vrot.slane %v1828_v0, 2  ;;  %v935_v19 = vunpack.c.l.bf16 %v2153_v7  ;;  %v1852_v27 = vrot.slane %v1830_v13, 2 }
  0x49   : > { %2496 = vmatmul.mubr.msk.f32.vlgmr.msra.gmra.mrb[0].mxu0 %vm279_vm0, %v1669_v22  ;;  %2429 = vmatmul.mubr.msk.f32.gmra.mrb[2].mxu1 %vm279_vm0, %v778_v23  ;;  %v787_v45 = vsel %vm766_vm2, %v785_v17, %v786_v49  ;;  %v1685_v31 = vrot.slane %v1646_v24, 1  ;;  %v2255_v22 = vld [vmem:[%s2670_s7 + $0x38] sm:$0xe]  ;;  %v2256_v23 = vld [vmem:[%s2670_s7 + $0x40] sm:$0xe]  ;;  %v1853_v33 = vrot.slane %v1639_v60, 2  ;;  %v1851_v12 = vsel %vm766_vm2, %v1849_v21, %v1850_v62 }
  0x4a   : > { %2508 = vmatpush3.msra.mxu0 %v2943_v8  ;;  %2498 = vmatprep.mubr.msk.f32.mxu0 %vm279_vm0, %v1672_v58  ;;  %v1683_v8 = vrot.slane %v1645_v29, 1  ;;  %v1848_v38 = vsel %vm766_vm2, %v1846_v15, %v1847_v59  ;;  %v1832_v39 = vunpack.c.l.bf16 %v2255_v22  ;;  %v1855_v6 = vrot.slane %v1831_v53, 2  ;;  %v2155_v17 = vld [vmem:[%s2670_s7 + $0x38] ss:$8 sps:$4 sm:$0xff]  }
  0x4b   : > { %2431 = vmatprep.mubr.msk.f32.mxu1 %vm279_vm0, %v781_v34  ;;  %v1687_v11 = vsel %vm586_vm1, %v1685_v31, %v1686_v47  ;;  %v1856_v32 = vrot.slane %v1641_v48, 2  ;;  %v1833_v58 = vunpack.c.l.bf16 %v2256_v23  ;;  %v2257_v34 = vld [vmem:[%s2670_s7 + $0x48] sm:$0xe]  ;;  %v936_v49 = vunpack.c.h.bf16 %v2153_v7 }
  0x4c   : > { %v1684_v1 = vsel %vm586_vm1, %v1682_v46, %v1683_v8  ;;  %v1854_v36 = vsel %vm766_vm2, %v1852_v27, %v1853_v33  ;;  %v1858_v60 = vrot.slane %v1832_v39, 2  ;;  %v1859_v35 = vrot.slane %v1643_v3, 2 }
  0x4d   : > { %2499 = vmatmul.mubr.msk.f32.gmra.mrb[2].mxu0 %vm279_vm0, %v1675_v50  ;;  %2432 = vmatmul.mubr.msk.f32.gmra.mrb[4].mxu1 %vm279_vm0, %v784_v37  ;;  %v1834_v50 = vunpack.c.l.bf16 %v2257_v34  ;;  %v1857_v55 = vsel %vm766_vm2, %v1855_v6, %v1856_v32  ;;  %v937_v48 = vunpack.c.l.bf16 %v2155_v17  ;;  %v1861_v37 = vrot.slane %v1833_v58, 2 }
  0x4e   : > { %2501 = vmatprep.mubr.msk.f32.mxu0 %vm279_vm0, %v1678_v25  ;;  %2434 = vmatprep.mubr.msk.f32.mxu1 %vm279_vm0, %v787_v45  ;;  %v1862_v40 = vrot.slane %v1645_v29, 2  ;;  %v1860_v41 = vsel %vm766_vm2, %v1858_v60, %v1859_v35  ;;  %v938_v5 = vunpack.c.h.bf16 %v2155_v17  ;;  %v1865_v43 = vrot.slane %v1647_v18, 2 }
  0x4f   : > { %v1864_v3 = vrot.slane %v1834_v50, 2 }
  0x50   : > { %v1863_v30 = vsel %vm766_vm2, %v1861_v37, %v1862_v40 }
  0x51   : > { %2502 = vmatmul.mubr.msk.f32.gmra.mrb[4].mxu0 %vm279_vm0, %v1681_v2  ;;  %2435 = vmatmul.mubr.msk.f32.gmra.mrb[6].mxu1 %vm279_vm0, %v790_v14  ;;  %v1866_v16 = vsel %vm766_vm2, %v1864_v3, %v1865_v43 }
  0x52   : > { %2504 = vmatprep.mubr.msk.f32.mxu0 %vm279_vm0, %v1684_v1  ;;  %2439 = vmatprep.mubr.msk.f32.mxu1 %vm279_vm0, %v931_v56 }
  0x55   : > { %2505 = vmatmul.mubr.msk.f32.gmra.mrb[6].mxu0 %vm279_vm0, %v1687_v11  ;;  %2440 = vmatmul.mubr.msk.f32.vlgmr.msra.gmra.mrb[0].mxu1 %vm279_vm0, %v932_v4 }
  0x56   : > { %2509 = vmatprep.mubr.msk.f32.mxu0 %vm279_vm0, %v1845_v10  ;;  %2442 = vmatprep.mubr.msk.f32.mxu1 %vm279_vm0, %v933_v9 }
  0x59   : > { %2510 = vmatmul.mubr.msk.f32.vlgmr.msra.gmra.mrb[0].mxu0 %vm279_vm0, %v1848_v38  ;;  %2443 = vmatmul.mubr.msk.f32.gmra.mrb[2].mxu1 %vm279_vm0, %v934_v28 }
  0x5a   : > { %2512 = vmatprep.mubr.msk.f32.mxu0 %vm279_vm0, %v1851_v12  ;;  %2445 = vmatprep.mubr.msk.f32.mxu1 %vm279_vm0, %v935_v19 }
  0x5d   : > { %2513 = vmatmul.mubr.msk.f32.gmra.mrb[2].mxu0 %vm279_vm0, %v1854_v36  ;;  %2446 = vmatmul.mubr.msk.f32.gmra.mrb[4].mxu1 %vm279_vm0, %v936_v49 }
  0x5e   : > { %2515 = vmatprep.mubr.msk.f32.mxu0 %vm279_vm0, %v1857_v55  ;;  %2448 = vmatprep.mubr.msk.f32.mxu1 %vm279_vm0, %v937_v48 }
  0x61   : > { %2516 = vmatmul.mubr.msk.f32.gmra.mrb[4].mxu0 %vm279_vm0, %v1860_v41  ;;  %2449 = vmatmul.mubr.msk.f32.gmra.mrb[6].mxu1 %vm279_vm0, %v938_v5 }
  0x62   : > { %2518 = vmatprep.mubr.msk.f32.mxu0 %vm279_vm0, %v1863_v30 }
  0x65   : > { %2519 = vmatmul.mubr.msk.f32.gmra.mrb[6].mxu0 %vm279_vm0, %v1866_v16 }
 0x128   : > { %v2441_v29 = vpop.f32.mrb[0].mxu1 }
 0x129   : > { %v1031_v24 = vpop.f32.mrb[1].mxu1 }
 0x12c   : > { %v2511_v25 = vpop.f32.mrb[0].mxu0  ;;  %v2444_v46 = vpop.f32.mrb[2].mxu1 }
 0x12d   : > { %v2521_v18 = vadd.f32 %v2511_v25, %v2441_v29  ;;  %v1951_v8 = vpop.f32.mrb[1].mxu0  ;;  %v1041_v54 = vpop.f32.mrb[3].mxu1 }
 0x12e   : > { %v2522_v51 = vadd.f32 %v1951_v8, %v1031_v24 }
 0x12f   : > { %v2006_v45 = vadd.f32 %v2521_v18, %v2267_v44 }
 0x130   : > { %v2005_v61 = vadd.f32 %v2522_v51, %v2267_v44  ;;  %v2514_v2 = vpop.f32.mrb[2].mxu0  ;;  %v2447_v31 = vpop.f32.mrb[4].mxu1 }
 0x131   : > { %v2014_v56 = vmax.f32 %v2006_v45, 0.0  ;;  %v2523_v14 = vadd.f32 %v2514_v2, %v2444_v46  ;;  %v1961_v47 = vpop.f32.mrb[3].mxu0  ;;  %v1051_v1 = vpop.f32.mrb[5].mxu1 }
 0x132   : > { %v2013_v63 = vmax.f32 %v2005_v61, 0.0  ;;  %v2524_v0 = vadd.f32 %v1961_v47, %v1041_v54 }
 0x133   : > { %v2022_v42 = vpack.c.bf16 %v2014_v56, %v2014_v56  ;;  %v2008_v52 = vadd.f32 %v2523_v14, %v2267_v44 }
 0x134   : > { %v2021_v26 = vpack.c.bf16 %v2013_v63, %v2013_v63  ;;  %v2007_v57 = vadd.f32 %v2524_v0, %v2267_v44  ;;  %v2517_v20 = vpop.f32.mrb[4].mxu0  ;;  %v2450_v11 = vpop.f32.mrb[6].mxu1 }
 0x135   : > { %2031 = vst.msk [vmem:[%s3138_s30 + $0x4] sm:$0xf] %vm2029_vm3, %v2022_v42  ;;  %v2016_v4 = vmax.f32 %v2008_v52, 0.0  ;;  %v2525_v9 = vadd.f32 %v2517_v20, %v2447_v31  ;;  %v1971_v15 = vpop.f32.mrb[5].mxu0  ;;  %v1061_v13 = vpop.f32.mrb[7].mxu1 }
 0x136   : > { %2030 = vst.msk [vmem:[%s3138_s30] sm:$0xf] %vm2029_vm3, %v2021_v26  ;;  %v2015_v59 = vmax.f32 %v2007_v57, 0.0  ;;  %v2526_v7 = vadd.f32 %v1971_v15, %v1051_v1 }
 0x137   : > { %v2024_v10 = vpack.c.bf16 %v2016_v4, %v2016_v4  ;;  %v2010_v21 = vadd.f32 %v2525_v9, %v2267_v44 }
 0x138   : > { %v2023_v62 = vpack.c.bf16 %v2015_v59, %v2015_v59  ;;  %v2009_v53 = vadd.f32 %v2526_v7, %v2267_v44  ;;  %v2520_v22 = vpop.f32.mrb[6].mxu0 }
 0x139   : > { %2033 = vst.msk [vmem:[%s3138_s30 + $0xc] sm:$0xf] %vm2029_vm3, %v2024_v10  ;;  %v2018_v23 = vmax.f32 %v2010_v21, 0.0  ;;  %v2527_v28 = vadd.f32 %v2520_v22, %v2450_v11  ;;  %v1981_v19 = vpop.f32.mrb[7].mxu0 }
 0x13a   : > { %2032 = vst.msk [vmem:[%s3138_s30 + $0x8] sm:$0xf] %vm2029_vm3, %v2023_v62  ;;  %v2017_v38 = vmax.f32 %v2009_v53, 0.0  ;;  %v2528_v27 = vadd.f32 %v1981_v19, %v1061_v13 }
 0x13b   : > { %v2026_v33 = vpack.c.bf16 %v2018_v23, %v2018_v23  ;;  %v2012_v39 = vadd.f32 %v2527_v28, %v2267_v44 }
 0x13c   : > { %v2025_v12 = vpack.c.bf16 %v2017_v38, %v2017_v38  ;;  %v2011_v6 = vadd.f32 %v2528_v27, %v2267_v44 }
 0x13d   : > { %2035 = vst.msk [vmem:[%s3138_s30 + $0x14] sm:$0xf] %vm2029_vm3, %v2026_v33  ;;  %v2020_v32 = vmax.f32 %v2012_v39, 0.0 }
 0x13e   : > { %2034 = vst.msk [vmem:[%s3138_s30 + $0x10] sm:$0xf] %vm2029_vm3, %v2025_v12  ;;  %v2019_v58 = vmax.f32 %v2011_v6, 0.0 }
 0x13f   : > { %v2028_v34 = vpack.c.bf16 %v2020_v32, %v2020_v32 }
 0x140   : > { %v2027_v17 = vpack.c.bf16 %v2019_v58, %v2019_v58 }
 0x141   : > { %2037 = vst.msk [vmem:[%s3138_s30 + $0x1c] sm:$0xf] %vm2029_vm3, %v2028_v34 }
 0x142   : > { %2036 = vst.msk [vmem:[%s3138_s30 + $0x18] sm:$0xf] %vm2029_vm3, %v2027_v17 }
 0x143 PF: > { %s15_s18 = sadd.s32 1, %s2608_s18  }
 0x144   : > { %p12_p4 = scmp.ge.s32.totalorder %s15_s18, 4  }
 0x146   :  { %14 = sbr.rel (!%p12_p4) target bundleno = 1 (0x1), region = 83 }

// kernel: residual_block_forward.2
= control target key start
LH: loop header
LB: loop body
LE: loop exit
PB: predicated region body
PF: predicated region fallthrough
CT: control target
= control target key end

     0   :  { %s2491_s12 = smov 0   ;;  %s2894_s0 = inlined_call_operand.vmem [shape: bf16[2,36,9,8], index: 0, kind: input, shape index: {}]   ;;  %s2895_s1 = inlined_call_operand.vmem [shape: f32[9,8,8], index: 1, kind: input, shape index: {}]   ;;  %s2896_s2 = inlined_call_operand.vmem [shape: f32[1,8], index: 2, kind: input, shape index: {}]   ;;  %s2897_s3 = inlined_call_operand.vmem [shape: bf16[2,10,10,8], index: 3, kind: output, shape index: {}]  }
   0x1 LB: > { %s1968_s13 = sadd.s32 4294967295, %s2468_s12   ;;  %p1972_p0 = scmp.ge.s32.totalorder %s2468_s12, 1  ;;  %s2468_s12 = sphi %s2491_s12, %s13_s12  }
   0x2   : > { %p137_p1 = scmp.lt.s32.totalorder %s2468_s12, 3 }
   0x4   : > { %p138_p2 = pnand %p1972_p0, %p137_p1 }
   0x5   : > { %v1983_v0 = vld [vmem:[%s2895_s1 + $0x8] sm:$0xff] (!%p138_p2)  ;;  %v2505_v1 = vld [vmem:[%s2895_s1 + $0x20] sm:$0xff] (!%p138_p2)  ;;  %p161_p3 = scmp.lt.s32.totalorder (!%p138_p2), %s1968_s13, 1  ;;  %vm208_vm0 = vcmask (!%p138_p2), 64512   ;;  %vm515_vm1 = vcmask (!%p138_p2), 1046528   ;;  %v2076_v25 = vld [vmem:[%s2895_s1 + $0x30] sm:$0xff] (!%p138_p2) }
   0x6   : > { %141 = sbr.rel (%p138_p2) target bundleno = 323 (0x143), region = 32  ;;  %v188_v2 = vld [vmem:[%s2895_s1] sm:$0xff] (!%p138_p2)  ;;  %2259 = vmatprep.subr.mxu1 (!%p138_p2), %v1983_v0  ;;  %2315 = vmatprep.subr.mxu0 (!%p138_p2), %v2505_v1  ;;  %v2059_v3 = vld [vmem:[%s2895_s1 + $0x28] sm:$0xff] (!%p138_p2)  ;;  %v2553_v30 = vld [vmem:[%s2895_s1 + $0x10] sm:$0xff] (!%p138_p2)  ;;  %vm1724_vm2 = vcmask (!%p138_p2), 60416   ;;  %vm1726_vm3 = vcmask (!%p138_p2), 57344  }
   0x7   : > { %2260 = vmatpush3.msra.mxu1 (!%p138_p2), %v1983_v0  ;;  %2316 = vmatpush3.msra.mxu0 (!%p138_p2), %v2505_v1  ;;  %v2579_v0 = vld [vmem:[%s2895_s1 + $0x38] sm:$0xff] (!%p138_p2)  ;;  %vm1860_vm4 = vsmask.f32 (!%p138_p2), 7938  ;;  %vm1866_vm5 = vsmask.f32 (!%p138_p2), 256 }
   0x8   : > { %2273 = vmatprep.subr.mxu1 (!%p138_p2), %v188_v2  ;;  %2329 = vmatprep.subr.mxu0 (!%p138_p2), %v2059_v3  ;;  %vm2814_vm6 = vmand (!%p138_p2), %vm1724_vm2, %vm1860_vm4 }
   0x9   : > { %vm2823_vm7 = vmand (!%p138_p2), %vm1726_vm3, %vm1866_vm5 }
   0xd   : > { %s2903_s13 = smov (!%p161_p3, %s1968_s13), 1 }
   0xe   : > { %s2451_s22 = smul.u32 288, %s2903_s13 }
   0xf   : > { %s2452_s9 = smul.u32 80, %s2903_s13 }
  0x10   : > { %s2521_s25 = scalar_lea.vmem %s2894_s0, %s2451_s22 }
  0x11   : > { %v1975_v4 = vld [vmem:[%s2521_s25 + $0x48] ss:$144 sps:$4 sm:$0xff]   ;;  %v1976_v5 = vld [vmem:[%s2521_s25 + $0x50] ss:$144 sps:$4 sm:$0xff]   ;;  %v2044_v13 = vld [vmem:[%s2521_s25 + $0x94] sm:$0x1]  ;;  %s2760_s14 = scalar_lea.vmem %s2897_s3, %s2452_s9 }
  0x12   : > { %v1977_v6 = vld [vmem:[%s2521_s25 + $0x58] ss:$144 sps:$4 sm:$0xff]   ;;  %v198_v7 = vunpack.c.l.bf16 %v1975_v4  ;;  %v836_v8 = vunpack.c.h.bf16 %v1975_v4  ;;  %v199_v9 = vunpack.c.l.bf16 %v1976_v5  ;;  %v837_v10 = vunpack.c.h.bf16 %v1976_v5  ;;  %v1978_v11 = vld [vmem:[%s2521_s25 + $0x60] ss:$144 sps:$4 sm:$0xff]   ;;  %v2046_v17 = vld [vmem:[%s2521_s25 + $0x9c] sm:$0x1] }
  0x13   : > { %v1979_v12 = vld [vmem:[%s2521_s25 + $0x68] ss:$40 sps:$4 sm:$0xff]   ;;  %v200_v14 = vunpack.c.l.bf16 %v1977_v6  ;;  %v838_v15 = vunpack.c.h.bf16 %v1977_v6  ;;  %v2534_v18 = vld [vmem:[%s2521_s25 + $0x78] ss:$40 sps:$4 sm:$0xff]   ;;  %v201_v19 = vunpack.c.l.bf16 %v1978_v11  ;;  %v1000_v21 = vunpack.c.l.bf16 %v2044_v13  ;;  %v2048_v22 = vld [vmem:[%s2521_s25 + $0xa4] sm:$0x1] }
  0x14   : > { %v2530_v16 = vld [vmem:[%s2521_s25 + $0x70] ss:$40 sps:$4 sm:$0xff]   ;;  %2261 = vmatprep.mubr.msk.f32.mxu1 %vm208_vm0, %v198_v7  ;;  %2317 = vmatprep.mubr.msk.f32.mxu0 %vm208_vm0, %v836_v8  ;;  %v999_v20 = vunpack.c.h.bf16 %v1979_v12  ;;  %v2540_v23 = vld [vmem:[%s2521_s25 + $0x80] ss:$40 sps:$4 sm:$0xff]   ;;  %v839_v24 = vunpack.c.h.bf16 %v1978_v11  ;;  %v1002_v27 = vunpack.c.l.bf16 %v2046_v17  ;;  %v1003_v28 = vunpack.c.h.bf16 %v2534_v18  ;;  %v2050_v29 = vld [vmem:[%s2521_s25 + $0xac] sm:$0x1] }
  0x15   : > { %2262 = vmatmul.mubr.msk.f32.vlgmr.msra.gmra.mrb[0].mxu1 %vm208_vm0, %v199_v9  ;;  %2318 = vmatmul.mubr.msk.f32.vlgmr.msra.gmra.mrb[0].mxu0 %vm208_vm0, %v837_v10  ;;  %v1001_v26 = vunpack.c.h.bf16 %v2530_v16  ;;  %v202_v31 = vunpack.c.l.bf16 %v1979_v12  ;;  %v1032_v33 = vrot.slane %v1000_v21, 1  ;;  %v1004_v34 = vunpack.c.l.bf16 %v2048_v22  ;;  %v172_v35 = vld [vmem:[%s2521_s25] ss:$176 sps:$4 sm:$0xff]   ;;  %v2052_v36 = vld [vmem:[%s2521_s25 + $0xb4] sm:$0x1]  ;;  %v2603_v21 = vld [vmem:[%s2895_s1 + $0x18] sm:$0xff] }
  0x16   : > { %2274 = vmatpush3.msra.mxu1 %v188_v2  ;;  %2330 = vmatpush3.msra.mxu0 %v2059_v3  ;;  %v1031_v32 = vrot.slane %v999_v20, 1  ;;  %v1035_v38 = vrot.slane %v1002_v27, 1  ;;  %v1005_v39 = vunpack.c.h.bf16 %v2540_v23  ;;  %v173_v40 = vld [vmem:[%s2521_s25 + $0x8] ss:$176 sps:$4 sm:$0xff]   ;;  %v1037_v42 = vrot.slane %v1003_v28, 1 }
  0x17   : > { %2264 = vmatprep.mubr.msk.f32.mxu1 %vm208_vm0, %v200_v14  ;;  %2320 = vmatprep.mubr.msk.f32.mxu0 %vm208_vm0, %v838_v15  ;;  %v1034_v37 = vrot.slane %v1001_v26, 1  ;;  %v1038_v43 = vrot.slane %v1004_v34, 1  ;;  %v1006_v44 = vunpack.c.l.bf16 %v2050_v29  ;;  %v2054_v45 = vld [vmem:[%s2521_s25 + $0xbc] sm:$0x1]  ;;  %v203_v46 = vunpack.c.l.bf16 %v2530_v16  ;;  %v174_v50 = vld [vmem:[%s2521_s25 + $0x10] ss:$176 sps:$4 sm:$0xff]  }
  0x18   : > { %v1033_v41 = vsel %vm515_vm1, %v1031_v32, %v1032_v33  ;;  %2343 = vmatprep.subr.mxu0 %v2076_v25  ;;  %2287 = vmatprep.subr.mxu1 %v2553_v30  ;;  %v1040_v47 = vrot.slane %v1005_v39, 1  ;;  %v1007_v48 = vunpack.c.h.bf16 %v172_v35  ;;  %v1008_v49 = vunpack.c.l.bf16 %v2052_v36  ;;  %v2056_v51 = vld [vmem:[%s2521_s25 + $0xc4] sm:$0x1]  ;;  %v175_v59 = vld [vmem:[%s2521_s25 + $0x18] ss:$176 sps:$4 sm:$0xff]  }
  0x19   : > { %2265 = vmatmul.mubr.msk.f32.gmra.mrb[2].mxu1 %vm208_vm0, %v201_v19  ;;  %2321 = vmatmul.mubr.msk.f32.gmra.mrb[2].mxu0 %vm208_vm0, %v839_v24  ;;  %v1036_v52 = vsel %vm515_vm1, %v1034_v37, %v1035_v38  ;;  %v204_v53 = vunpack.c.l.bf16 %v2534_v18  ;;  %v1041_v54 = vrot.slane %v1006_v44, 1  ;;  %v1009_v55 = vunpack.c.h.bf16 %v173_v40  ;;  %v2058_v60 = vld [vmem:[%s2521_s25 + $0xcc] sm:$0x1]  ;;  %v176_v17 = vld [vmem:[%s2521_s25 + $0x8] ss:$24 sps:$4 sm:$0xff]  }
  0x1a   : > { %2267 = vmatprep.mubr.msk.f32.mxu1 %vm208_vm0, %v202_v31  ;;  %2331 = vmatprep.mubr.msk.f32.mxu0 %vm208_vm0, %v1033_v41  ;;  %v1043_v56 = vrot.slane %v1007_v48, 1  ;;  %v1044_v57 = vrot.slane %v1008_v49, 1  ;;  %v1010_v58 = vunpack.c.l.bf16 %v2054_v45  ;;  %v1039_v61 = vsel %vm515_vm1, %v1037_v42, %v1038_v43  ;;  %v2597_v19 = vld [vmem:[%s2521_s25] ss:$40 sps:$4 sm:$0xff]   ;;  %v468_v20 = vld [vmem:[%s2521_s25 + $0x4] sm:$0x1] }
  0x1b   : > { %v1011_v62 = vunpack.c.h.bf16 %v174_v50  ;;  %v1012_v63 = vunpack.c.l.bf16 %v2056_v51  ;;  %v205_v2 = vunpack.c.l.bf16 %v2540_v23  ;;  %v1042_v3 = vsel %vm515_vm1, %v1040_v47, %v1041_v54  ;;  %v177_v26 = vld [vmem:[%s2521_s25 + $0x10] ss:$24 sps:$4 sm:$0xff]   ;;  %v472_v33 = vld [vmem:[%s2521_s25 + $0x14] sm:$0x1]  ;;  %v179_v37 = vld [vmem:[%s2521_s25 + $0x20] ss:$24 sps:$4 sm:$0xff]  }
  0x1c   : > { %v180_v4 = vunpack.c.l.bf16 %v172_v35  ;;  %v1046_v5 = vrot.slane %v1009_v55, 1  ;;  %v1047_v6 = vrot.slane %v1010_v58, 1  ;;  %v1013_v7 = vunpack.c.h.bf16 %v175_v59  ;;  %v178_v27 = vld [vmem:[%s2521_s25 + $0x18] ss:$24 sps:$4 sm:$0xff]   ;;  %v474_v43 = vld [vmem:[%s2521_s25 + $0x1c] sm:$0x1] }
  0x1d   : > { %2268 = vmatmul.mubr.msk.f32.gmra.mrb[4].mxu1 %vm208_vm0, %v203_v46  ;;  %2332 = vmatmul.mubr.msk.f32.vlgmr.msra.gmra.mrb[0].mxu0 %vm208_vm0, %v1036_v52  ;;  %v1014_v8 = vunpack.c.l.bf16 %v2058_v60  ;;  %v1045_v9 = vsel %vm515_vm1, %v1043_v56, %v1044_v57  ;;  %v1049_v10 = vrot.slane %v1011_v62, 1  ;;  %v1050_v11 = vrot.slane %v1012_v63, 1  ;;  %v2613_v28 = vld [vmem:[%s2521_s25 + $0x8] ss:$40 sps:$4 sm:$0xff]   ;;  %v2631_v42 = vld [vmem:[%s2521_s25 + $0x18] ss:$40 sps:$4 sm:$0xff]  }
  0x1e   : > { %2344 = vmatpush3.msra.mxu0 %v2076_v25  ;;  %2270 = vmatprep.mubr.msk.f32.mxu1 %vm208_vm0, %v204_v53  ;;  %v181_v12 = vunpack.c.l.bf16 %v173_v40  ;;  %v1048_v13 = vsel %vm515_vm1, %v1046_v5, %v1047_v6  ;;  %v182_v14 = vunpack.c.l.bf16 %v174_v50  ;;  %v1052_v15 = vrot.slane %v1013_v7, 1  ;;  %v2620_v32 = vld [vmem:[%s2521_s25 + $0x10] ss:$40 sps:$4 sm:$0xff]   ;;  %v476_v49 = vld [vmem:[%s2521_s25 + $0x24] sm:$0x1] }
  0x1f   : > { %2334 = vmatprep.mubr.msk.f32.mxu0 %vm208_vm0, %v1039_v61  ;;  %2357 = vmatprep.subr.mxu0 %v2579_v0  ;;  %v1053_v16 = vrot.slane %v1014_v8, 1  ;;  %v1051_v18 = vsel %vm515_vm1, %v1049_v10, %v1050_v11  ;;  %v183_v22 = vunpack.c.l.bf16 %v175_v59  ;;  %v184_v24 = vunpack.c.h.bf16 %v176_v17  ;;  %v2635_v48 = vld [vmem:[%s2521_s25 + $0x20] ss:$48 sps:$4 sm:$0xff]   ;;  %v477_v62 = vld [vmem:[%s2521_s25 + $0x28] ss:$48 sps:$4 sm:$0xff]  }
  0x20   : > { %v1195_v25 = vunpack.c.l.bf16 %v176_v17  ;;  %v483_v29 = vunpack.c.l.bf16 %v2597_v19  ;;  %v484_v31 = vunpack.c.l.bf16 %v468_v20  ;;  %v185_v34 = vunpack.c.h.bf16 %v177_v26  ;;  %v2641_v50 = vld [vmem:[%s2895_s1 + $0x40] sm:$0xff]  ;;  %v478_v63 = vld [vmem:[%s2521_s25 + $0x2c] sm:$0x1] }
  0x21   : > { %2271 = vmatmul.mubr.msk.f32.gmra.mrb[6].mxu1 %vm208_vm0, %v205_v2  ;;  %2335 = vmatmul.mubr.msk.f32.gmra.mrb[2].mxu0 %vm208_vm0, %v1042_v3  ;;  %v1054_v23 = vsel %vm515_vm1, %v1052_v15, %v1053_v16  ;;  %v1196_v35 = vunpack.c.l.bf16 %v177_v26  ;;  %v186_v36 = vunpack.c.h.bf16 %v178_v27  ;;  %v485_v38 = vunpack.c.l.bf16 %v2613_v28  ;;  %v479_v2 = vld [vmem:[%s2521_s25 + $0x30] ss:$48 sps:$4 sm:$0xff]   ;;  %v480_v3 = vld [vmem:[%s2521_s25 + $0x34] sm:$0x1]  ;;  %v481_v15 = vld [vmem:[%s2521_s25 + $0x38] ss:$48 sps:$4 sm:$0xff]  }
  0x22   : > { %2275 = vmatprep.mubr.msk.f32.mxu1 %vm208_vm0, %v180_v4  ;;  %2337 = vmatprep.mubr.msk.f32.mxu0 %vm208_vm0, %v1045_v9  ;;  %v487_v40 = vunpack.c.l.bf16 %v2620_v32  ;;  %v488_v41 = vunpack.c.l.bf16 %v472_v33  ;;  %v1197_v44 = vunpack.c.l.bf16 %v178_v27  ;;  %v516_v45 = vrot.slane %v483_v29, 1  ;;  %v482_v16 = vld [vmem:[%s2521_s25 + $0x3c] sm:$0x1]  ;;  %v2009_v33 = vld [vmem:[%s2521_s25 + $0x90] ss:$8 sps:$4 sm:$0xff]  }
  0x23   : > { %v517_v46 = vrot.slane %v484_v31, 1  ;;  %v187_v47 = vunpack.c.h.bf16 %v179_v37  ;;  %v1198_v51 = vunpack.c.l.bf16 %v179_v37  ;;  %v1199_v52 = vunpack.c.h.bf16 %v2597_v19 }
  0x24   : > { %v489_v53 = vunpack.c.l.bf16 %v2631_v42  ;;  %v490_v54 = vunpack.c.l.bf16 %v474_v43  ;;  %v519_v55 = vrot.slane %v485_v38, 1  ;;  %v522_v57 = vrot.slane %v487_v40, 1 }
  0x25   : > { %2276 = vmatmul.mubr.msk.f32.vlgmr.msra.gmra.mrb[0].mxu1 %vm208_vm0, %v181_v12  ;;  %2338 = vmatmul.mubr.msk.f32.gmra.mrb[4].mxu0 %vm208_vm0, %v1048_v13  ;;  %v523_v58 = vrot.slane %v488_v41, 1  ;;  %v518_v59 = vsel %vm515_vm1, %v516_v45, %v517_v46  ;;  %v491_v60 = vunpack.c.l.bf16 %v2635_v48  ;;  %v492_v61 = vunpack.c.l.bf16 %v476_v49  ;;  %v2011_v41 = vld [vmem:[%s2521_s25 + $0xa0] ss:$8 sps:$4 sm:$0xff]   ;;  %v2105_v45 = vld [vmem:[%s2521_s25 + $0x14] sm:$0x1] }
  0x26   : > { %2288 = vmatpush3.msra.mxu1 %v2553_v30  ;;  %2278 = vmatprep.mubr.msk.f32.mxu1 %vm208_vm0, %v182_v14  ;;  %v470_v30 = vld [vmem:[%s2521_s25 + $0xc] sm:$0x1]  ;;  %v1201_v4 = vunpack.c.h.bf16 %v2620_v32  ;;  %v525_v5 = vrot.slane %v489_v53, 1  ;;  %v526_v6 = vrot.slane %v490_v54, 1  ;;  %v493_v9 = vunpack.c.l.bf16 %v477_v62  ;;  %v2702_v46 = vld [vmem:[%s2521_s25 + $0x18] ss:$168 sps:$4 sm:$0xff]  }
  0x27   : > { %2340 = vmatprep.mubr.msk.f32.mxu0 %vm208_vm0, %v1051_v18  ;;  %2301 = vmatprep.subr.mxu1 %v2603_v21  ;;  %v486_v39 = vunpack.c.l.bf16 %v470_v30  ;;  %v524_v8 = vsel %vm515_vm1, %v522_v57, %v523_v58  ;;  %v494_v10 = vunpack.c.l.bf16 %v478_v63  ;;  %v528_v11 = vrot.slane %v491_v60, 1  ;;  %v2109_v57 = vld [vmem:[%s2521_s25 + $0x24] sm:$0x1]  ;;  %v2111_v63 = vld [vmem:[%s2521_s25 + $0x2c] sm:$0x1] }
  0x28   : > { %v529_v12 = vrot.slane %v492_v61, 1  ;;  %v495_v13 = vunpack.c.l.bf16 %v479_v2  ;;  %v496_v14 = vunpack.c.l.bf16 %v480_v3  ;;  %v527_v17 = vsel %vm515_vm1, %v525_v5, %v526_v6 }
  0x29   : > { %2279 = vmatmul.mubr.msk.f32.gmra.mrb[2].mxu1 %vm208_vm0, %v183_v22  ;;  %2341 = vmatmul.mubr.msk.f32.gmra.mrb[6].mxu0 %vm208_vm0, %v1054_v23  ;;  %v520_v56 = vrot.slane %v486_v39, 1  ;;  %v1202_v18 = vunpack.c.h.bf16 %v2631_v42  ;;  %v1351_v19 = vunpack.c.h.bf16 %v2635_v48  ;;  %v531_v20 = vrot.slane %v493_v9, 1  ;;  %v2696_v42 = vld [vmem:[%s2521_s25 + $0x10] ss:$168 sps:$4 sm:$0xff]   ;;  %v2091_v48 = vld [vmem:[%s2521_s25 + $0x80] ss:$8 sps:$4 sm:$0xff]  }
  0x2a   : > { %2281 = vmatprep.mubr.msk.f32.mxu1 %vm208_vm0, %v184_v24  ;;  %2345 = vmatprep.mubr.msk.f32.mxu0 %vm208_vm0, %v1195_v25  ;;  %v532_v22 = vrot.slane %v494_v10, 1  ;;  %v497_v23 = vunpack.c.l.bf16 %v481_v15  ;;  %v498_v24 = vunpack.c.l.bf16 %v482_v16  ;;  %v530_v25 = vsel %vm515_vm1, %v528_v11, %v529_v12  ;;  %v2031_v12 = vld [vmem:[%s2521_s25 + $0x30] ss:$208 sps:$4 sm:$0xff]  }
  0x2b   : > { %v521_v7 = vsel %vm515_vm1, %v519_v55, %v520_v56  ;;  %v534_v26 = vrot.slane %v495_v13, 1  ;;  %v535_v27 = vrot.slane %v496_v14, 1  ;;  %v1353_v32 = vunpack.c.h.bf16 %v479_v2  ;;  %v2016_v56 = vld [vmem:[%s2521_s25 + $0x20] ss:$168 sps:$4 sm:$0xff]   ;;  %v2113_v13 = vld [vmem:[%s2521_s25 + $0x34] sm:$0x1] }
  0x2c   : > { %v537_v29 = vrot.slane %v497_v23, 1  ;;  %v538_v31 = vrot.slane %v498_v24, 1  ;;  %v1354_v37 = vunpack.c.h.bf16 %v481_v15  ;;  %v680_v39 = vunpack.c.l.bf16 %v2009_v33  ;;  %v2032_v14 = vld [vmem:[%s2521_s25 + $0x38] ss:$208 sps:$4 sm:$0xff]   ;;  %v2115_v15 = vld [vmem:[%s2521_s25 + $0x3c] sm:$0x1] }
  0x2d   : > { %2282 = vmatmul.mubr.msk.f32.gmra.mrb[4].mxu1 %vm208_vm0, %v185_v34  ;;  %2346 = vmatmul.mubr.msk.f32.vlgmr.msra.gmra.mrb[0].mxu0 %vm208_vm0, %v1196_v35  ;;  %v536_v30 = vsel %vm515_vm1, %v534_v26, %v535_v27  ;;  %v2089_v34 = vld [vmem:[%s2521_s25 + $0x70] ss:$8 sps:$4 sm:$0xff]   ;;  %v681_v49 = vunpack.c.h.bf16 %v2009_v33  ;;  %v1517_v53 = vunpack.c.l.bf16 %v2105_v45  ;;  %v1518_v54 = vunpack.c.l.bf16 %v2702_v46 }
  0x2e   : > { %2358 = vmatpush3.msra.mxu0 %v2579_v0  ;;  %2284 = vmatprep.mubr.msk.f32.mxu1 %vm208_vm0, %v186_v36  ;;  %v1200_v0 = vunpack.c.h.bf16 %v2613_v28  ;;  %v533_v28 = vsel %vm515_vm1, %v531_v20, %v532_v22  ;;  %v2686_v35 = vld [vmem:[%s2521_s25 + $0x8] ss:$168 sps:$4 sm:$0xff]   ;;  %v2103_v36 = vld [vmem:[%s2521_s25 + $0xc] sm:$0x1]  ;;  %v539_v38 = vsel %vm515_vm1, %v537_v29, %v538_v31  ;;  %v1355_v40 = vunpack.c.l.bf16 %v2089_v34 }
  0x2f   : > { %2348 = vmatprep.mubr.msk.f32.mxu0 %vm208_vm0, %v1197_v44  ;;  %2371 = vmatprep.subr.mxu0 %v2641_v50  ;;  %v1514_v43 = vunpack.c.l.bf16 %v2686_v35  ;;  %v1515_v44 = vunpack.c.l.bf16 %v2103_v36  ;;  %v1357_v58 = vunpack.c.l.bf16 %v2091_v48  ;;  %v683_v61 = vunpack.c.h.bf16 %v2011_v41 }
  0x30   : > { %v1358_v2 = vunpack.c.h.bf16 %v2091_v48  ;;  %v684_v3 = vunpack.c.h.bf16 %v2686_v35  ;;  %v1550_v6 = vrot.slane %v1517_v53, 1  ;;  %v1523_v11 = vunpack.c.l.bf16 %v2111_v63  ;;  %v2805_v53 = vld [vmem:[%s2896_s2] ss:$0 sm:$0xff] }
  0x31   : > { %2285 = vmatmul.mubr.msk.f32.gmra.mrb[6].mxu1 %vm208_vm0, %v187_v47  ;;  %2349 = vmatmul.mubr.msk.f32.gmra.mrb[2].mxu0 %vm208_vm0, %v1198_v51  ;;  %v2107_v47 = vld [vmem:[%s2521_s25 + $0x1c] sm:$0x1]  ;;  %v682_v51 = vunpack.c.l.bf16 %v2011_v41  ;;  %v1547_v60 = vrot.slane %v1515_v44, 1  ;;  %v686_v16 = vunpack.c.h.bf16 %v2702_v46  ;;  %v1524_v22 = vunpack.c.l.bf16 %v2031_v12 }
  0x32   : > { %2289 = vmatprep.mubr.msk.f32.mxu1 %vm208_vm0, %v518_v59  ;;  %2351 = vmatprep.mubr.msk.f32.mxu0 %vm208_vm0, %v1199_v52  ;;  %v1516_v52 = vunpack.c.l.bf16 %v2696_v42  ;;  %v1519_v55 = vunpack.c.l.bf16 %v2107_v47  ;;  %v1546_v59 = vrot.slane %v1514_v43, 1  ;;  %v1525_v23 = vunpack.c.l.bf16 %v2113_v13 }
  0x33   : > { %v1526_v26 = vunpack.c.l.bf16 %v2032_v14  ;;  %v1527_v27 = vunpack.c.l.bf16 %v2115_v15  ;;  %v687_v29 = vunpack.c.h.bf16 %v2016_v56  ;;  %v842_v41 = vunpack.c.h.bf16 %v2032_v14 }
  0x34   : > { %v1549_v5 = vrot.slane %v1516_v52, 1  ;;  %v1548_v9 = vsel %vm515_vm1, %v1546_v59, %v1547_v60  ;;  %v1562_v33 = vrot.slane %v1525_v23, 1  ;;  %v2470_v47 = vmov 0  }
  0x35   : > { %2290 = vmatmul.mubr.msk.f32.vlgmr.msra.gmra.mrb[0].mxu1 %vm208_vm0, %v521_v7  ;;  %2352 = vmatmul.mubr.msk.f32.gmra.mrb[4].mxu0 %vm208_vm0, %v1200_v0  ;;  %v1520_v0 = vunpack.c.l.bf16 %v2016_v56  ;;  %v1552_v7 = vrot.slane %v1518_v54, 1  ;;  %1725 = vst.msk [vmem:[%s2760_s14] sm:$0xf] %vm1724_vm2, %v2470_v47  ;;  %1730 = vst.msk [vmem:[%s2760_s14 + $0x10] sm:$0xf] %vm1724_vm2, %v2470_v47 }
  0x36   : > { %2302 = vmatpush3.msra.mxu1 %v2603_v21  ;;  %2292 = vmatprep.mubr.msk.f32.mxu1 %vm208_vm0, %v524_v8  ;;  %v1352_v21 = vunpack.c.h.bf16 %v477_v62  ;;  %v2030_v62 = vld [vmem:[%s2521_s25 + $0x28] ss:$208 sps:$4 sm:$0xff]   ;;  %v1553_v8 = vrot.slane %v1519_v55, 1  ;;  %1727 = vst.msk [vmem:[%s2760_s14 + $0x4] sm:$0x1] %vm1726_vm3, %v2470_v47 }
  0x37   : > { %2354 = vmatprep.mubr.msk.f32.mxu0 %vm208_vm0, %v1201_v4  ;;  %2385 = vmatprep.subr.mxu1 %v2505_v1  ;;  %v1521_v4 = vunpack.c.l.bf16 %v2109_v57  ;;  %v1522_v10 = vunpack.c.l.bf16 %v2030_v62  ;;  %1731 = vst.msk [vmem:[%s2760_s14 + $0x14] sm:$0x1] %vm1726_vm3, %v2470_v47  ;;  %1745 = vst.msk [vmem:[%s2760_s14 + $0x4c] sm:$0x1] %vm1726_vm3, %v2470_v47 }
  0x38   : > { %v1554_v20 = vsel %vm515_vm1, %v1552_v7, %v1553_v8  ;;  %1744 = vst.msk [vmem:[%s2760_s14 + $0x48] sm:$0xf] %vm1724_vm2, %v2470_v47  ;;  %1728 = vst.msk [vmem:[%s2760_s14 + $0x8] sm:$0xf] %vm1724_vm2, %v2470_v47 }
  0x39   : > { %2293 = vmatmul.mubr.msk.f32.gmra.mrb[2].mxu1 %vm208_vm0, %v527_v17  ;;  %2355 = vmatmul.mubr.msk.f32.gmra.mrb[6].mxu0 %vm208_vm0, %v1202_v18  ;;  %v1555_v17 = vrot.slane %v1520_v0, 1  ;;  %v1556_v18 = vrot.slane %v1521_v4, 1  ;;  %v1558_v24 = vrot.slane %v1522_v10, 1  ;;  %1729 = vst.msk [vmem:[%s2760_s14 + $0xc] sm:$0x1] %vm1726_vm3, %v2470_v47 }
  0x3a   : > { %2295 = vmatprep.mubr.msk.f32.mxu1 %vm208_vm0, %v530_v25  ;;  %2359 = vmatprep.mubr.msk.f32.mxu0 %vm208_vm0, %v1351_v19  ;;  %v1551_v19 = vsel %vm515_vm1, %v1549_v5, %v1550_v6  ;;  %v1559_v25 = vrot.slane %v1523_v11, 1  ;;  %1732 = vst.msk [vmem:[%s2760_s14 + $0x18] sm:$0xf] %vm1724_vm2, %v2470_v47  ;;  %1734 = vst.msk [vmem:[%s2760_s14 + $0x20] sm:$0xf] %vm1724_vm2, %v2470_v47 }
  0x3b   : > { %v1557_v31 = vsel %vm515_vm1, %v1555_v17, %v1556_v18  ;;  %1733 = vst.msk [vmem:[%s2760_s14 + $0x1c] sm:$0x1] %vm1726_vm3, %v2470_v47  ;;  %1735 = vst.msk [vmem:[%s2760_s14 + $0x24] sm:$0x1] %vm1726_vm3, %v2470_v47 }
  0x3c   : > { %v1560_v36 = vsel %vm515_vm1, %v1558_v24, %v1559_v25  ;;  %1736 = vst.msk [vmem:[%s2760_s14 + $0x28] sm:$0xf] %vm1724_vm2, %v2470_v47  ;;  %1738 = vst.msk [vmem:[%s2760_s14 + $0x30] sm:$0xf] %vm1724_vm2, %v2470_v47  ;;  %v2140_v13 = vld [vmem:[%s2760_s14 + $0x10] sm:$0xf] }
  0x3d   : > { %2296 = vmatmul.mubr.msk.f32.gmra.mrb[4].mxu1 %vm208_vm0, %v533_v28  ;;  %2360 = vmatmul.mubr.msk.f32.vlgmr.msra.gmra.mrb[0].mxu0 %vm208_vm0, %v1352_v21  ;;  %v2033_v21 = vld [vmem:[%s2521_s25 + $0x40] ss:$208 sps:$4 sm:$0xff]   ;;  %v2117_v28 = vld [vmem:[%s2521_s25 + $0x44] sm:$0x1]  ;;  %1737 = vst.msk [vmem:[%s2760_s14 + $0x2c] sm:$0x1] %vm1726_vm3, %v2470_v47 }
  0x3e   : > { %2372 = vmatpush3.msra.mxu0 %v2641_v50  ;;  %2298 = vmatprep.mubr.msk.f32.mxu1 %vm208_vm0, %v536_v30  ;;  %v1356_v50 = vunpack.c.h.bf16 %v2089_v34  ;;  %v840_v30 = vunpack.c.h.bf16 %v2030_v62  ;;  %v1528_v34 = vunpack.c.l.bf16 %v2033_v21  ;;  %v1529_v35 = vunpack.c.l.bf16 %v2117_v28  ;;  %1739 = vst.msk [vmem:[%s2760_s14 + $0x34] sm:$0x1] %vm1726_vm3, %v2470_v47  ;;  %1741 = vst.msk [vmem:[%s2760_s14 + $0x3c] sm:$0x1] %vm1726_vm3, %v2470_v47 }
  0x3f   : > { %2362 = vmatprep.mubr.msk.f32.mxu0 %vm208_vm0, %v1353_v32  ;;  %v1561_v32 = vrot.slane %v1524_v22, 1  ;;  %v843_v45 = vunpack.c.h.bf16 %v2033_v21  ;;  %1740 = vst.msk [vmem:[%s2760_s14 + $0x38] sm:$0xf] %vm1724_vm2, %v2470_v47  ;;  %1742 = vst.msk [vmem:[%s2760_s14 + $0x40] sm:$0xf] %vm1724_vm2, %v2470_v47 }
  0x40   : > { %v1568_v43 = vrot.slane %v1529_v35, 1  ;;  %1743 = vst.msk [vmem:[%s2760_s14 + $0x44] sm:$0x1] %vm1726_vm3, %v2470_v47 }
  0x41   : > { %2299 = vmatmul.mubr.msk.f32.gmra.mrb[6].mxu1 %vm208_vm0, %v539_v38  ;;  %2363 = vmatmul.mubr.msk.f32.gmra.mrb[2].mxu0 %vm208_vm0, %v1354_v37  ;;  %v1564_v37 = vrot.slane %v1526_v26, 1  ;;  %v1565_v38 = vrot.slane %v1527_v27, 1  ;;  %v2138_v27 = vld [vmem:[%s2760_s14 + $0xc] sm:$0x1]  ;;  %v2148_v47 = vld [vmem:[%s2760_s14 + $0x20] sm:$0xf] }
  0x42   : > { %2303 = vmatprep.mubr.msk.f32.mxu1 %vm208_vm0, %v680_v39  ;;  %2365 = vmatprep.mubr.msk.f32.mxu0 %vm208_vm0, %v1355_v40  ;;  %v841_v39 = vunpack.c.h.bf16 %v2031_v12  ;;  %v1563_v40 = vsel %vm515_vm1, %v1561_v32, %v1562_v33 }
  0x43   : > { %v1566_v44 = vsel %vm515_vm1, %v1564_v37, %v1565_v38 }
  0x45   : > { %2304 = vmatmul.mubr.msk.f32.vlgmr.msra.gmra.mrb[0].mxu1 %vm208_vm0, %v681_v49  ;;  %2366 = vmatmul.mubr.msk.f32.gmra.mrb[4].mxu0 %vm208_vm0, %v1356_v50 }
  0x46   : > { %2386 = vmatpush3.msra.mxu1 %v2505_v1  ;;  %2306 = vmatprep.mubr.msk.f32.mxu1 %vm208_vm0, %v682_v51  ;;  %v685_v1 = vunpack.c.h.bf16 %v2696_v42  ;;  %v1567_v42 = vrot.slane %v1528_v34, 1 }
  0x47   : > { %2368 = vmatprep.mubr.msk.f32.mxu0 %vm208_vm0, %v1357_v58 }
  0x48   : > { %v1569_v46 = vsel %vm515_vm1, %v1567_v42, %v1568_v43 }
  0x49   : > { %2307 = vmatmul.mubr.msk.f32.gmra.mrb[2].mxu1 %vm208_vm0, %v683_v61  ;;  %2369 = vmatmul.mubr.msk.f32.gmra.mrb[6].mxu0 %vm208_vm0, %v1358_v2 }
  0x4a   : > { %2309 = vmatprep.mubr.msk.f32.mxu1 %vm208_vm0, %v684_v3  ;;  %2373 = vmatprep.mubr.msk.f32.mxu0 %vm208_vm0, %v1548_v9 }
  0x4d   : > { %2310 = vmatmul.mubr.msk.f32.gmra.mrb[4].mxu1 %vm208_vm0, %v685_v1  ;;  %2374 = vmatmul.mubr.msk.f32.vlgmr.msra.gmra.mrb[0].mxu0 %vm208_vm0, %v1551_v19  ;;  %v2142_v19 = vld [vmem:[%s2760_s14 + $0x14] sm:$0x1] }
  0x4e   : > { %2312 = vmatprep.mubr.msk.f32.mxu1 %vm208_vm0, %v686_v16  ;;  %2376 = vmatprep.mubr.msk.f32.mxu0 %vm208_vm0, %v1554_v20  ;;  %v2136_v20 = vld [vmem:[%s2760_s14 + $0x8] sm:$0xf] }
  0x51   : > { %2313 = vmatmul.mubr.msk.f32.gmra.mrb[6].mxu1 %vm208_vm0, %v687_v29  ;;  %2377 = vmatmul.mubr.msk.f32.gmra.mrb[2].mxu0 %vm208_vm0, %v1557_v31 }
  0x52   : > { %2323 = vmatprep.mubr.msk.f32.mxu1 %vm208_vm0, %v840_v30  ;;  %2379 = vmatprep.mubr.msk.f32.mxu0 %vm208_vm0, %v1560_v36 }
  0x55   : > { %2324 = vmatmul.mubr.msk.f32.vlgmr.msra.gmra.mrb[4].mxu1 %vm208_vm0, %v841_v39  ;;  %2380 = vmatmul.mubr.msk.f32.gmra.mrb[4].mxu0 %vm208_vm0, %v1563_v40 }
  0x56   : > { %2326 = vmatprep.mubr.msk.f32.mxu1 %vm208_vm0, %v842_v41  ;;  %2382 = vmatprep.mubr.msk.f32.mxu0 %vm208_vm0, %v1566_v44 }
  0x59   : > { %2327 = vmatmul.mubr.msk.f32.gmra.mrb[6].mxu1 %vm208_vm0, %v843_v45  ;;  %2383 = vmatmul.mubr.msk.f32.gmra.mrb[6].mxu0 %vm208_vm0, %v1569_v46 }
 0x118   : > { %v2305_v48 = vpop.f32.mrb[0].mxu1 }
 0x119   : > { %v780_v49 = vpop.f32.mrb[1].mxu1 }
 0x11c   : > { %v2308_v50 = vpop.f32.mrb[2].mxu1 }
 0x11d   : > { %v790_v51 = vpop.f32.mrb[3].mxu1 }
 0x120   : > { %v2375_v52 = vpop.f32.mrb[0].mxu0 }
 0x121   : > { %v2387_v54 = vadd.f32 %v2375_v52, %v2305_v48  ;;  %v1654_v55 = vpop.f32.mrb[1].mxu0  ;;  %v2150_v48 = vld [vmem:[%s2760_s14 + $0x24] sm:$0x1] }
 0x122   : > { %v2388_v56 = vadd.f32 %v1654_v55, %v780_v49  ;;  %v2146_v55 = vld [vmem:[%s2760_s14 + $0x1c] sm:$0x1] }
 0x123   : > { %v1709_v57 = vadd.f32 %v2387_v54, %v2805_v53  ;;  %v2144_v54 = vld [vmem:[%s2760_s14 + $0x18] sm:$0xf] }
 0x124   : > { %v1708_v58 = vadd.f32 %v2388_v56, %v2805_v53  ;;  %v2378_v59 = vpop.f32.mrb[2].mxu0 }
 0x125   : > { %v1717_v60 = vmax.f32 %v1709_v57, 0.0  ;;  %v2389_v61 = vadd.f32 %v2378_v59, %v2308_v50  ;;  %v1664_v62 = vpop.f32.mrb[3].mxu0 }
 0x126   : > { %v1716_v63 = vmax.f32 %v1708_v58, 0.0  ;;  %v2390_v2 = vadd.f32 %v1664_v62, %v790_v51 }
 0x127   : > { %v2171_v3 = vpack.c.bf16 %v1717_v60, %v1717_v60  ;;  %v1711_v0 = vadd.f32 %v2389_v61, %v2805_v53 }
 0x128   : > { %v2170_v4 = vpack.c.bf16 %v1716_v63, %v1716_v63  ;;  %v1710_v5 = vadd.f32 %v2390_v2, %v2805_v53  ;;  %v2325_v6 = vpop.f32.mrb[4].mxu1  ;;  %v2381_v7 = vpop.f32.mrb[4].mxu0 }
 0x129   : > { %v1787_v8 = vshrl.u32 %v2171_v3, 16  ;;  %v1719_v9 = vmax.f32 %v1711_v0, 0.0  ;;  %v2391_v10 = vadd.f32 %v2381_v7, %v2325_v6  ;;  %v956_v11 = vpop.f32.mrb[5].mxu1  ;;  %v1674_v12 = vpop.f32.mrb[5].mxu0  ;;  %v1790_v17 = vshll.u32 %v2171_v3, 16 }
 0x12a   : > { %v1779_v14 = vshrl.u32 %v2170_v4, 16  ;;  %v1718_v15 = vmax.f32 %v1710_v5, 0.0  ;;  %v2392_v1 = vadd.f32 %v1674_v12, %v956_v11  ;;  %v1782_v26 = vshll.u32 %v2170_v4, 16  ;;  %v2156_v7 = vld [vmem:[%s2760_s14 + $0x30] sm:$0xf] }
 0x12b   : > { %v1789_v16 = vrot.slane %v1787_v8, 7  ;;  %v2173_v22 = vpack.c.bf16 %v1719_v9, %v1719_v9  ;;  %v1713_v23 = vadd.f32 %v2391_v10, %v2805_v53  ;;  %v2158_v10 = vld [vmem:[%s2760_s14 + $0x34] sm:$0x1] }
 0x12c   : > { %v1781_v25 = vrot.slane %v1779_v14, 7  ;;  %v2172_v21 = vpack.c.bf16 %v1718_v15, %v1718_v15  ;;  %v1712_v28 = vadd.f32 %v2392_v1, %v2805_v53  ;;  %v2328_v29 = vpop.f32.mrb[6].mxu1  ;;  %v2384_v31 = vpop.f32.mrb[6].mxu0  ;;  %v2154_v1 = vld [vmem:[%s2760_s14 + $0x2c] sm:$0x1] }
 0x12d   : > { %v1792_v30 = vor.u32 %v1790_v17, %v1789_v16  ;;  %v1793_v32 = vrot.slane %v1789_v16, 4  ;;  %v1803_v33 = vshrl.u32 %v2173_v22, 16  ;;  %v1806_v34 = vshll.u32 %v2173_v22, 16  ;;  %v966_v35 = vpop.f32.mrb[7].mxu1  ;;  %v1684_v36 = vpop.f32.mrb[7].mxu0 }
 0x12e   : > { %v1784_v37 = vor.u32 %v1782_v26, %v1781_v25  ;;  %v1785_v38 = vrot.slane %v1781_v25, 4  ;;  %v1795_v39 = vshrl.u32 %v2172_v21, 16  ;;  %v1798_v40 = vshll.u32 %v2172_v21, 16 }
 0x12f   : > { %v1872_v41 = vsel %vm2814_vm6, %v1792_v30, %v2140_v13  ;;  %v1875_v42 = vsel %vm2823_vm7, %v1793_v32, %v2142_v19  ;;  %v1805_v43 = vrot.slane %v1803_v33, 7  ;;  %v1721_v44 = vmax.f32 %v1713_v23, 0.0  ;;  %v2152_v13 = vld [vmem:[%s2760_s14 + $0x28] sm:$0xf]  ;;  %v2164_v30 = vld [vmem:[%s2760_s14 + $0x40] sm:$0xf] }
 0x130   : > { %2141 = vst [vmem:[%s2760_s14 + $0x10] sm:$0xf] %v1872_v41  ;;  %2143 = vst [vmem:[%s2760_s14 + $0x14] sm:$0x1] %v1875_v42  ;;  %v1863_v45 = vsel %vm2814_vm6, %v1784_v37, %v2136_v20  ;;  %v1869_v46 = vsel %vm2823_vm7, %v1785_v38, %v2138_v27  ;;  %v1797_v49 = vrot.slane %v1795_v39, 7  ;;  %v1720_v50 = vmax.f32 %v1712_v28, 0.0 }
 0x131   : > { %2137 = vst [vmem:[%s2760_s14 + $0x8] sm:$0xf] %v1863_v45  ;;  %2139 = vst [vmem:[%s2760_s14 + $0xc] sm:$0x1] %v1869_v46  ;;  %v1808_v51 = vor.u32 %v1806_v34, %v1805_v43  ;;  %v1809_v52 = vrot.slane %v1805_v43, 4  ;;  %v2175_v56 = vpack.c.bf16 %v1721_v44, %v1721_v44  ;;  %v2393_v57 = vadd.f32 %v2384_v31, %v2328_v29 }
 0x132   : > { %v1800_v58 = vor.u32 %v1798_v40, %v1797_v49  ;;  %v1801_v59 = vrot.slane %v1797_v49, 4  ;;  %v2174_v60 = vpack.c.bf16 %v1720_v50, %v1720_v50  ;;  %v2394_v61 = vadd.f32 %v1684_v36, %v966_v35  ;;  %v2166_v34 = vld [vmem:[%s2760_s14 + $0x44] sm:$0x1]  ;;  %v2160_v35 = vld [vmem:[%s2760_s14 + $0x38] sm:$0xf] }
 0x133   : > { %v1884_v62 = vsel %vm2814_vm6, %v1808_v51, %v2148_v47  ;;  %v1887_v63 = vsel %vm2823_vm7, %v1809_v52, %v2150_v48  ;;  %v1819_v2 = vshrl.u32 %v2175_v56, 16  ;;  %v1822_v6 = vshll.u32 %v2175_v56, 16  ;;  %v2162_v36 = vld [vmem:[%s2760_s14 + $0x3c] sm:$0x1] }
 0x134   : > { %2149 = vst [vmem:[%s2760_s14 + $0x20] sm:$0xf] %v1884_v62  ;;  %2151 = vst [vmem:[%s2760_s14 + $0x24] sm:$0x1] %v1887_v63  ;;  %v1878_v3 = vsel %vm2814_vm6, %v1800_v58, %v2144_v54  ;;  %v1881_v0 = vsel %vm2823_vm7, %v1801_v59, %v2146_v55  ;;  %v1811_v4 = vshrl.u32 %v2174_v60, 16  ;;  %v1715_v8 = vadd.f32 %v2393_v57, %v2805_v53 }
 0x135   : > { %2145 = vst [vmem:[%s2760_s14 + $0x18] sm:$0xf] %v1878_v3  ;;  %2147 = vst [vmem:[%s2760_s14 + $0x1c] sm:$0x1] %v1881_v0  ;;  %v1821_v5 = vrot.slane %v1819_v2, 7  ;;  %v1714_v9 = vadd.f32 %v2394_v61, %v2805_v53  ;;  %v1814_v12 = vshll.u32 %v2174_v60, 16 }
 0x136   : > { %v1813_v11 = vrot.slane %v1811_v4, 7  ;;  %v1723_v16 = vmax.f32 %v1715_v8, 0.0 }
 0x137   : > { %v1824_v14 = vor.u32 %v1822_v6, %v1821_v5  ;;  %v1825_v15 = vrot.slane %v1821_v5, 4  ;;  %v1722_v17 = vmax.f32 %v1714_v9, 0.0 }
 0x138   : > { %v1816_v19 = vor.u32 %v1814_v12, %v1813_v11  ;;  %v1817_v20 = vrot.slane %v1813_v11, 4  ;;  %v2177_v23 = vpack.c.bf16 %v1723_v16, %v1723_v16 }
 0x139   : > { %v1896_v22 = vsel %vm2814_vm6, %v1824_v14, %v2156_v7  ;;  %v1899_v53 = vsel %vm2823_vm7, %v1825_v15, %v2158_v10  ;;  %v2176_v25 = vpack.c.bf16 %v1722_v17, %v1722_v17 }
 0x13a   : > { %2157 = vst [vmem:[%s2760_s14 + $0x30] sm:$0xf] %v1896_v22  ;;  %2159 = vst [vmem:[%s2760_s14 + $0x34] sm:$0x1] %v1899_v53  ;;  %v1890_v26 = vsel %vm2814_vm6, %v1816_v19, %v2152_v13  ;;  %v1893_v27 = vsel %vm2823_vm7, %v1817_v20, %v2154_v1  ;;  %v1835_v21 = vshrl.u32 %v2177_v23, 16  ;;  %v1838_v31 = vshll.u32 %v2177_v23, 16 }
 0x13b   : > { %2153 = vst [vmem:[%s2760_s14 + $0x28] sm:$0xf] %v1890_v26  ;;  %2155 = vst [vmem:[%s2760_s14 + $0x2c] sm:$0x1] %v1893_v27  ;;  %v1827_v28 = vshrl.u32 %v2176_v25, 16  ;;  %v1830_v33 = vshll.u32 %v2176_v25, 16 }
 0x13c   : > { %v1837_v29 = vrot.slane %v1835_v21, 7 }
 0x13d   : > { %v1829_v32 = vrot.slane %v1827_v28, 7 }
 0x13e   : > { %v1840_v37 = vor.u32 %v1838_v31, %v1837_v29  ;;  %v1841_v38 = vrot.slane %v1837_v29, 4 }
 0x13f   : > { %v1832_v39 = vor.u32 %v1830_v33, %v1829_v32  ;;  %v1833_v40 = vrot.slane %v1829_v32, 4 }
 0x140   : > { %v1908_v41 = vsel %vm2814_vm6, %v1840_v37, %v2164_v30  ;;  %v1911_v42 = vsel %vm2823_vm7, %v1841_v38, %v2166_v34 }
 0x141   : > { %v1902_v43 = vsel %vm2814_vm6, %v1832_v39, %v2160_v35  ;;  %v1905_v44 = vsel %vm2823_vm7, %v1833_v40, %v2162_v36  ;;  %2165 = vst [vmem:[%s2760_s14 + $0x40] sm:$0xf] %v1908_v41  ;;  %2167 = vst [vmem:[%s2760_s14 + $0x44] sm:$0x1] %v1911_v42 }
 0x142   : > { %2161 = vst [vmem:[%s2760_s14 + $0x38] sm:$0xf] %v1902_v43  ;;  %2163 = vst [vmem:[%s2760_s14 + $0x3c] sm:$0x1] %v1905_v44 }
 0x143 PF: > { %s13_s12 = sadd.s32 1, %s2468_s12  }
 0x144   : > { %p10_p4 = scmp.ge.s32.totalorder %s13_s12, 4  }
 0x146   :  { %12 = sbr.rel (!%p10_p4) target bundleno = 1 (0x1), region = 76 }

</bundles_post_ra>
